<compile_context>
chip_gen: v7x
topology: tpu7x:2x2x1
jax: 0.10.0
libtpu: 0.0.40
codegen_flags: <defaults>
</compile_context>

<pallas_src>
import functools

import jax
import jax.numpy as jnp
import numpy as np
from jax.experimental import pallas as pl
from jax.experimental.pallas import tpu as pltpu
from jax.scipy.linalg import block_diag
from jax.scipy.special import logsumexp

PHYSICS_WEIGHT = 0.1

# --- amino-acid property tables (identical to AminoAcidProperties) -----------
HYDRO = {'A': 1.8, 'C': 2.5, 'D': -3.5, 'E': -3.5, 'F': 2.8, 'G': -0.4,
         'H': -3.2, 'I': 4.5, 'K': -3.9, 'L': 3.8, 'M': 1.9, 'N': -3.5,
         'P': -1.6, 'Q': -3.5, 'R': -4.5, 'S': -0.8, 'T': -0.7, 'V': 4.2,
         'W': -0.9, 'Y': -1.3}
CHARGE = {'A': 0, 'C': 0, 'D': -1, 'E': -1, 'F': 0, 'G': 0, 'H': 0.5, 'I': 0,
          'K': 1, 'L': 0, 'M': 0, 'N': 0, 'P': 0, 'Q': 0, 'R': 1, 'S': 0,
          'T': 0, 'V': 0, 'W': 0, 'Y': 0}
HB_DON = {'A': 0, 'C': 0, 'D': 0, 'E': 0, 'F': 0, 'G': 0, 'H': 1, 'I': 0,
          'K': 1, 'L': 0, 'M': 0, 'N': 1, 'P': 0, 'Q': 1, 'R': 2, 'S': 1,
          'T': 1, 'V': 0, 'W': 1, 'Y': 1}
HB_ACC = {'A': 0, 'C': 0, 'D': 2, 'E': 2, 'F': 0, 'G': 0, 'H': 1, 'I': 0,
          'K': 0, 'L': 0, 'M': 1, 'N': 1, 'P': 0, 'Q': 1, 'R': 0, 'S': 1,
          'T': 1, 'V': 0, 'W': 0, 'Y': 1}


def _round_up(x, m):
    return ((x + m - 1) // m) * m


# ------------------------------------------------------------------------
# Pallas kernel: SAE encode / fused physics MLPs / modulation / decode +
# masked, grid-resident physics-loss accumulators (one (8,8) block per core).
# ------------------------------------------------------------------------
def sae_fused_kernel(pw, n_valid, tiles_per_core,
                     x_ref, tgt_ref, enc_w_ref, enc_b_ref, dec_w_ref, bias_ref,
                     w1_ref, b1_ref, w2_ref, b2_ref, w3_ref, b3_ref,
                     xrec_ref, feat_ref, loss_ref):
    g = pl.program_id(0)          # core-split axis ("parallel")
    i = pl.program_id(1)          # row-tile axis within a core ("arbitrary")
    tn = x_ref.shape[0]

    # init this core's loss accumulator block
    @pl.when(i == 0)
    def _():
        loss_ref[...] = jnp.zeros_like(loss_ref)

    x = x_ref[...]                                         # [TN, A_pad] f32

    # --- encode: relu(x @ W_enc + enc_b')  (pre-encoder bias folded into enc_b')
    f = jnp.maximum(
        jnp.dot(x.astype(jnp.bfloat16), enc_w_ref[...],
                preferred_element_type=jnp.float32) + enc_b_ref[...], 0.0)   # [TN, D_pad]

    # --- fused physics extractors (3 matmuls: concat layer-1, block-diag 2/3) ---
    h1 = jnp.maximum(
        jnp.dot(f.astype(jnp.bfloat16), w1_ref[...],
                preferred_element_type=jnp.float32) + b1_ref[...], 0.0)      # [TN, H1_pad]
    h2 = jnp.maximum(
        jnp.dot(h1.astype(jnp.bfloat16), w2_ref[...],
                preferred_element_type=jnp.float32) + b2_ref[...], 0.0)      # [TN, H2_pad]
    heads = (jnp.dot(h2.astype(jnp.bfloat16), w3_ref[...],
                     preferred_element_type=jnp.float32) + b3_ref[...])      # [TN, 8]

    hydro_logit = heads[:, 0:1]
    charge_logit = heads[:, 1:4]
    hbond = heads[:, 4:6]

    # exact sigmoid / softmax (f32) on the feature path
    hydro = 1.0 / (1.0 + jnp.exp(-hydro_logit))                              # [TN,1]
    cmax = jnp.max(charge_logit, axis=-1, keepdims=True)
    cexp = jnp.exp(charge_logit - cmax)
    charge = cexp / jnp.sum(cexp, axis=-1, keepdims=True)                    # [TN,3]

    # --- apply constraints: single [TN,1] modulation, one fused blend ----------
    hydro_mod = 1.0 + pw * (hydro - 0.5)
    charge_mod = 1.0 + pw * (charge[:, 0:1] - charge[:, 1:2])
    hbond_mod = 1.0 + pw * (0.5 * (hbond[:, 0:1] + hbond[:, 1:2]) - 0.5)
    mod = hydro_mod * charge_mod * hbond_mod
    f_blend = f * ((1.0 - pw) + pw * mod)                                    # [TN, D_pad]

    feat_ref[...] = f_blend
    xrec_ref[...] = (jnp.dot(f_blend.astype(jnp.bfloat16), dec_w_ref[...],
                             preferred_element_type=jnp.float32) + bias_ref[...])

    # --- fused physics losses (masked raw sums, accumulated per core) ----------
    row = jax.lax.broadcasted_iota(jnp.int32, (tn, 1), 0) + (g * tiles_per_core + i) * tn
    valid = (row < n_valid).astype(jnp.float32)                              # [TN,1]

    tgt = tgt_ref[...]                                   # [TN,8] = [hydro|charge(3)|hbond(2)|0,0]
    ht, ct, bt = tgt[:, 0:1], tgt[:, 1:4], tgt[:, 4:6]

    hd = hydro - ht
    bd = hbond - bt
    # charge "cross entropy" applied to the softmax probabilities (bug-for-bug
    # with the reference, which calls F.cross_entropy on softmax output).
    m2 = jnp.max(charge, axis=-1, keepdims=True)
    lse = jnp.log(jnp.sum(jnp.exp(charge - m2), axis=-1, keepdims=True)) + m2
    picked = jnp.sum(charge * ct, axis=-1, keepdims=True)

    per_row = valid * jnp.concatenate(
        [hd * hd,
         lse - picked,
         jnp.sum(bd * bd, axis=-1, keepdims=True),
         jnp.zeros((tn, 5), jnp.float32)], axis=1)                           # [TN,8]
    # cross-sublane reduce via ones-matrix MXU dot; result replicated over 8 rows
    loss_ref[...] += jnp.dot(jnp.ones((8, tn), jnp.float32), per_row,
                             preferred_element_type=jnp.float32)             # [8,8]


# ------------------------------------------------------------------------
# Wrapper helpers
# ------------------------------------------------------------------------
def _prepare_params(p):
    """Fuse extractor MLPs, fold the pre-encoder bias, pad to lane-dense shapes,
    and cast matmul weights to bf16 (biases stay f32)."""
    A, D = p["enc_w"].shape
    H = p["hw1"].shape[1]
    h2 = H // 2
    A_pad, D_pad = _round_up(A, 128), _round_up(D, 128)
    H1, H2c = 3 * H, 3 * h2
    H1_pad, H2_pad = _round_up(H1, 128), _round_up(H2c, 128)

    enc_b_fold = p["enc_b"] - p["bias"] @ p["enc_w"]          # fold (x - bias) @ W

    w1 = jnp.concatenate([p["hw1"], p["cw1"], p["bw1"]], axis=1)     # [D, 3H]
    b1 = jnp.concatenate([p["hb1"], p["cb1"], p["bb1"]], axis=1)
    w2 = block_diag(p["hw2"], p["cw2"], p["bw2"])                    # [3H, 3H/2]
    b2 = jnp.concatenate([p["hb2"], p["cb2"], p["bb2"]], axis=1)
    w3 = block_diag(p["hw3"], p["cw3"], p["bw3"])                    # [3H/2, 6]
    b3 = jnp.concatenate([p["hb3"], p["cb3"], p["bb3"]], axis=1)

    def padw(a, r, c):
        return jnp.pad(a, ((0, r - a.shape[0]), (0, c - a.shape[1])))

    pp = {
        "enc_w": padw(p["enc_w"], A_pad, D_pad).astype(jnp.bfloat16),
        "enc_b": padw(enc_b_fold, 1, D_pad),
        "dec_w": padw(p["dec_w"], D_pad, A_pad).astype(jnp.bfloat16),
        "bias":  padw(p["bias"], 1, A_pad),
        "w1": padw(w1, D_pad, H1_pad).astype(jnp.bfloat16),
        "b1": padw(b1, 1, H1_pad),
        "w2": padw(w2, H1_pad, H2_pad).astype(jnp.bfloat16),
        "b2": padw(b2, 1, H2_pad),
        "w3": padw(w3, H2_pad, 8).astype(jnp.bfloat16),
        "b3": padw(b3, 1, 8),
    }
    dims = dict(A=A, D=D, A_pad=A_pad, D_pad=D_pad, H1_pad=H1_pad, H2_pad=H2_pad)
    return pp, dims


def _per_row_bytes(dims):
    A_pad, D_pad = dims["A_pad"], dims["D_pad"]
    H1_pad, H2_pad = dims["H1_pad"], dims["H2_pad"]
    pipe = 2 * 4 * (2 * A_pad + D_pad + 2 * 8)            # double-buffered x/tgt/xrec/feat
    live = 4 * (2 * D_pad + H1_pad + H2_pad + 32)         # f, f_blend, h1, h2, heads, per_row
    live += 2 * (A_pad + 2 * D_pad + H1_pad + H2_pad)     # bf16 matmul-operand copies
    return pipe + live


def _choose_tile_rows(n, dims, weight_bytes):
    """Row-tile size: multiple of 8, as big as the per-generation VMEM budget allows
    (only the row-tiled HBM blocks are counted as double-buffered)."""
    try:
        vmem_cap = int(pltpu.get_tpu_info().vmem_capacity_bytes)
    except Exception:
        vmem_cap = 64 * 1024 * 1024          # conservative (v7x per-core VMEM)
    budget = min(vmem_cap // 3, 32 * 1024 * 1024)
    per_row = _per_row_bytes(dims)
    avail = max(budget - 2 * weight_bytes, per_row * 8)
    tn = max(8, min(2048, (avail // per_row) // 8 * 8))
    # keep at least two row tiles so the leading "parallel" axis can split the
    # rows across the two v7x TensorCores (no-op on 1-TC chips)
    if n > 8:
        tn = min(tn, _round_up((n + 1) // 2, 8))
    return min(tn, _round_up(n, 8))


def _plan_grid(n, tn):
    tiles = pl.cdiv(n, tn)
    G = 2 if tiles >= 2 else 1
    tiles = _round_up(tiles, G)
    return G, tiles // G, tiles * tn


def _run_fused(x2, tgt, pp, dims, n_valid, tn, G, tiles_per_core, vmem_limit):
    n_pad = x2.shape[0]
    A_pad, D_pad = dims["A_pad"], dims["D_pad"]

    def row_map(g, i):
        return (g * tiles_per_core + i, 0)

    def fixed_map(g, i):
        return (0, 0)

    weight_arrays = [pp["enc_w"], pp["enc_b"], pp["dec_w"], pp["bias"],
                     pp["w1"], pp["b1"], pp["w2"], pp["b2"], pp["w3"], pp["b3"]]

    out_shapes = (jax.ShapeDtypeStruct((n_pad, A_pad), jnp.float32),
                  jax.ShapeDtypeStruct((n_pad, D_pad), jnp.float32),
                  jax.ShapeDtypeStruct((G * 8, 8), jnp.float32))
    out_specs = (pl.BlockSpec((tn, A_pad), row_map),
                 pl.BlockSpec((tn, D_pad), row_map),
                 pl.BlockSpec((8, 8), lambda g, i: (g, 0)))

    kernel = functools.partial(sae_fused_kernel, PHYSICS_WEIGHT, n_valid, tiles_per_core)

    def build(single_buffer_weights):
        wkw = ({"pipeline_mode": pl.Buffered(1)} if single_buffer_weights else {})
        in_specs = ([pl.BlockSpec((tn, A_pad), row_map),
                     pl.BlockSpec((tn, 8), row_map)]
                    + [pl.BlockSpec(a.shape, fixed_map, **wkw) for a in weight_arrays])
        return pl.pallas_call(
            kernel,
            grid=(G, tiles_per_core),
            in_specs=in_specs,
            out_specs=out_specs,
            out_shape=out_shapes,
            compiler_params=pltpu.CompilerParams(
                dimension_semantics=("parallel", "arbitrary"),
                vmem_limit_bytes=vmem_limit),
        )

    args = (x2, tgt, *weight_arrays)
    try:
        # single-buffer the invariant weight/bias blocks (constant index_map)
        return build(True)(*args)
    except Exception:
        # TODO(synk): pl.Buffered(1) not supported by this jax version -> fall back
        # to the default double-buffered invariant inputs.
        return build(False)(*args)


def biophysics_guided_sae_forward(x, params, sequences):
    """Mirrors BiophysicsGuidedSAE.forward(x, sequences, structures=None,
    return_physics_loss=True).  Returns (x_reconstructed, features, losses)."""
    B, S, A = x.shape
    D = params["enc_w"].shape[1]
    N = B * S

    pp, dims = _prepare_params(params)
    A_pad, D_pad = dims["A_pad"], dims["D_pad"]

    x2 = jnp.pad(x.reshape(N, A).astype(jnp.float32), ((0, 0), (0, A_pad - A)))
    hydro_t, charge_t, hbond_t = build_targets(sequences)
    tgt = jnp.concatenate([hydro_t.reshape(N, 1), charge_t.reshape(N, 3),
                           hbond_t.reshape(N, 2), jnp.zeros((N, 2), jnp.float32)],
                          axis=1)                                           # [N, 8]

    weight_bytes = int(sum(int(v.size) * v.dtype.itemsize for v in pp.values()))
    # TODO(synk): for production dict_size where even bf16 weights exceed VMEM,
    # add a reduction grid axis over D (weight streaming); not needed at these sizes.
    tn = _choose_tile_rows(N, dims, weight_bytes)
    G, tiles_per_core, n_pad = _plan_grid(N, tn)
    if n_pad != N:
        x2 = jnp.pad(x2, ((0, n_pad - N), (0, 0)))
        tgt = jnp.pad(tgt, ((0, n_pad - N), (0, 0)))

    vmem_needed = 2 * weight_bytes + tn * _per_row_bytes(dims) + (4 << 20)
    vmem_limit = int(min(max(vmem_needed, 32 << 20), 50 << 20))

    xrec_p, feat_p, loss_raw = _run_fused(x2, tgt, pp, dims, N, tn, G,
                                          tiles_per_core, vmem_limit)

    # combine the per-core partial sums and normalize outside the kernel
    sums = loss_raw.reshape(G, 8, 8)[:, 0, :].sum(axis=0)
    losses = {"hydrophobic": sums[0] / N,
              "charge": sums[1] / N,
              "hbond": sums[2] / (2.0 * N)}
    # TODO(synk): 'spatial' / geometric-hbond losses need `structures`; the
    # reference forward omits them when structures is None, as we do here.
    return (xrec_p[:N, :A].reshape(B, S, A),
            feat_p[:N, :D].reshape(B, S, D),
            losses)


# ------------------------------------------------------------------------
# Deterministic parameter init + ground-truth property targets (plain glue)
# ------------------------------------------------------------------------
def _linear_init(key, fan_in, fan_out):
    kw, kb = jax.random.split(key)
    bound = 1.0 / np.sqrt(fan_in)
    w = jax.random.uniform(kw, (fan_in, fan_out), jnp.float32, -bound, bound)
    b = jax.random.uniform(kb, (1, fan_out), jnp.float32, -bound, bound)
    return w, b


def init_params(key, activation_dim, dict_size, hidden_dim):
    h2 = hidden_dim // 2
    keys = jax.random.split(key, 16)
    p = {}
    p["enc_w"], p["enc_b"] = _linear_init(keys[0], activation_dim, dict_size)
    dec_w, _ = _linear_init(keys[1], dict_size, activation_dim)   # [D, A] = W_dec.T
    # decoder.weight normalized with p=2 along dim=0 (over activation_dim)
    p["dec_w"] = dec_w / jnp.linalg.norm(dec_w, axis=1, keepdims=True)
    p["bias"] = jnp.zeros((1, activation_dim), jnp.float32)
    # hydrophobic extractor: D -> H -> H/2 -> 1
    p["hw1"], p["hb1"] = _linear_init(keys[2], dict_size, hidden_dim)
    p["hw2"], p["hb2"] = _linear_init(keys[3], hidden_dim, h2)
    p["hw3"], p["hb3"] = _linear_init(keys[4], h2, 1)
    # charge extractor: D -> H -> H/2 -> 3
    p["cw1"], p["cb1"] = _linear_init(keys[5], dict_size, hidden_dim)
    p["cw2"], p["cb2"] = _linear_init(keys[6], hidden_dim, h2)
    p["cw3"], p["cb3"] = _linear_init(keys[7], h2, 3)
    # hbond extractor: D -> H -> H/2 -> 2
    p["bw1"], p["bb1"] = _linear_init(keys[8], dict_size, hidden_dim)
    p["bw2"], p["bb2"] = _linear_init(keys[9], hidden_dim, h2)
    p["bw3"], p["bb3"] = _linear_init(keys[10], h2, 2)
    return p


def build_targets(sequences):
    B, S = len(sequences), len(sequences[0])
    hydro_t = np.zeros((B, S, 1), np.float32)
    charge_t = np.zeros((B, S, 3), np.float32)
    hbond_t = np.zeros((B, S, 2), np.float32)
    for b, seq in enumerate(sequences):
        for i, aa in enumerate(seq):
            if aa in HYDRO:
                hydro_t[b, i, 0] = (HYDRO[aa] + 5.0) / 10.0
                c = CHARGE[aa]
                if c > 0:
                    charge_t[b, i, 0] = 1.0
                elif c < 0:
                    charge_t[b, i, 1] = 1.0
                else:
                    charge_t[b, i, 2] = 1.0
                hbond_t[b, i, 0] = HB_DON[aa]
                hbond_t[b, i, 1] = HB_ACC[aa]
    return jnp.asarray(hydro_t), jnp.asarray(charge_t), jnp.asarray(hbond_t)


# ------------------------------------------------------------------------
# Pure-JAX f32 reference (PyTorch semantics) for correctness check
# ------------------------------------------------------------------------
def reference_forward(x, p, sequences, pw):
    B, S, A = x.shape
    x2 = x.reshape(B * S, A)
    f = jax.nn.relu((x2 - p["bias"]) @ p["enc_w"] + p["enc_b"])

    def mlp(z, w1, b1, w2, b2, w3, b3):
        z = jax.nn.relu(z @ w1 + b1)
        z = jax.nn.relu(z @ w2 + b2)
        return z @ w3 + b3

    hydro = jax.nn.sigmoid(mlp(f, p["hw1"], p["hb1"], p["hw2"], p["hb2"], p["hw3"], p["hb3"]))
    charge = jax.nn.softmax(mlp(f, p["cw1"], p["cb1"], p["cw2"], p["cb2"], p["cw3"], p["cb3"]), axis=-1)
    hbond = mlp(f, p["bw1"], p["bb1"], p["bw2"], p["bb2"], p["bw3"], p["bb3"])

    hydro_mod = 1.0 + pw * (hydro - 0.5)
    charge_mod = 1.0 + pw * (charge[:, 0:1] - charge[:, 1:2])
    hbond_mod = 1.0 + pw * (hbond.mean(axis=-1, keepdims=True) - 0.5)
    constrained = f * hydro_mod * charge_mod * hbond_mod
    f_blend = (1.0 - pw) * f + pw * constrained
    xrec = f_blend @ p["dec_w"] + p["bias"]

    hydro_t, charge_t, hbond_t = build_targets(sequences)
    hydro_t = hydro_t.reshape(-1, 1)
    charge_t = charge_t.reshape(-1, 3)
    hbond_t = hbond_t.reshape(-1, 2)
    hydro_loss = jnp.mean((hydro - hydro_t) ** 2)
    hbond_loss = jnp.mean((hbond - hbond_t) ** 2)
    lse = logsumexp(charge, axis=-1)
    charge_loss = jnp.mean(lse - jnp.sum(charge * charge_t, axis=-1))
    losses = {"hydrophobic": hydro_loss, "charge": charge_loss, "hbond": hbond_loss}
    return xrec.reshape(B, S, A), f_blend.reshape(B, S, -1), losses


# ------------------------------------------------------------------------
if __name__ == "__main__":
    activation_dim, dict_size, hidden_dim = 32, 64, 64
    key = jax.random.PRNGKey(0)
    kx, kp = jax.random.split(key)
    params = init_params(kp, activation_dim, dict_size, hidden_dim)

    test_cases = [
        (2, 8, ["ACDEFGHI", "KLMNPQRS"]),   # N=16 -> two row tiles / two-core split
        (2, 5, ["ACDEF", "GHIKL"]),         # N=10 -> padded rows exercise masking
    ]

    for B, S, sequences in test_cases:
        kx, kin = jax.random.split(kx)
        x = jax.random.normal(kin, (B, S, activation_dim), jnp.float32)

        xrec, feats, losses = biophysics_guided_sae_forward(x, params, sequences)
        jax.block_until_ready((xrec, feats, losses))

        # correctness check against the f32 pure-JAX reference; tolerances reflect
        # the deliberate bf16 MXU operands (f32 accumulation) inside the kernel.
        xrec_r, feats_r, losses_r = reference_forward(x, params, sequences, PHYSICS_WEIGHT)
        np.testing.assert_allclose(np.asarray(xrec), np.asarray(xrec_r),
                                   rtol=6e-2, atol=6e-2)
        np.testing.assert_allclose(np.asarray(feats), np.asarray(feats_r),
                                   rtol=6e-2, atol=6e-2)
        for k in losses:
            np.testing.assert_allclose(float(losses[k]), float(losses_r[k]),
                                       rtol=6e-2, atol=3e-2)

    print("KERNEL_OK")
</pallas_src>

<mosaic_0001>
module attributes {stable_mosaic.version = 11 : i64} {
  func.func @sae_fused_kernel(%arg0: i32, %arg1: i32, %arg2: memref<8x128xf32, #tpu.memory_space<vmem>>, %arg3: memref<8x8xf32, #tpu.memory_space<vmem>>, %arg4: memref<128x128xbf16, #tpu.memory_space<vmem>>, %arg5: memref<1x128xf32, #tpu.memory_space<vmem>>, %arg6: memref<128x128xbf16, #tpu.memory_space<vmem>>, %arg7: memref<1x128xf32, #tpu.memory_space<vmem>>, %arg8: memref<128x256xbf16, #tpu.memory_space<vmem>>, %arg9: memref<1x256xf32, #tpu.memory_space<vmem>>, %arg10: memref<256x128xbf16, #tpu.memory_space<vmem>>, %arg11: memref<1x128xf32, #tpu.memory_space<vmem>>, %arg12: memref<128x8xbf16, #tpu.memory_space<vmem>>, %arg13: memref<1x8xf32, #tpu.memory_space<vmem>>, %arg14: memref<8x128xf32, #tpu.memory_space<vmem>>, %arg15: memref<8x128xf32, #tpu.memory_space<vmem>>, %arg16: memref<8x8xf32, #tpu.memory_space<vmem>>) attributes {dimension_semantics = [#tpu.dimension_semantics<parallel>, #tpu.dimension_semantics<arbitrary>], iteration_bounds = array<i64: 2, 1>, scalar_prefetch = 0 : i64, scratch_operands = 0 : i64, tpu.core_type = #tpu.core_type<tc>, window_params = [{transform_indices = @transform_0, window_bounds = array<i64: 8, 128>}, {transform_indices = @transform_1, window_bounds = array<i64: 8, 8>}, {pipeline_mode = #tpu.pipeline_mode<synchronous>, transform_indices = @transform_2, window_bounds = array<i64: 128, 128>}, {pipeline_mode = #tpu.pipeline_mode<synchronous>, transform_indices = @transform_3, window_bounds = array<i64: 1, 128>}, {pipeline_mode = #tpu.pipeline_mode<synchronous>, transform_indices = @transform_4, window_bounds = array<i64: 128, 128>}, {pipeline_mode = #tpu.pipeline_mode<synchronous>, transform_indices = @transform_5, window_bounds = array<i64: 1, 128>}, {pipeline_mode = #tpu.pipeline_mode<synchronous>, transform_indices = @transform_6, window_bounds = array<i64: 128, 256>}, {pipeline_mode = #tpu.pipeline_mode<synchronous>, transform_indices = @transform_7, window_bounds = array<i64: 1, 256>}, {pipeline_mode = #tpu.pipeline_mode<synchronous>, transform_indices = @transform_8, window_bounds = array<i64: 256, 128>}, {pipeline_mode = #tpu.pipeline_mode<synchronous>, transform_indices = @transform_9, window_bounds = array<i64: 1, 128>}, {pipeline_mode = #tpu.pipeline_mode<synchronous>, transform_indices = @transform_10, window_bounds = array<i64: 128, 8>}, {pipeline_mode = #tpu.pipeline_mode<synchronous>, transform_indices = @transform_11, window_bounds = array<i64: 1, 8>}, {transform_indices = @transform_12, window_bounds = array<i64: 8, 128>}, {transform_indices = @transform_13, window_bounds = array<i64: 8, 128>}, {transform_indices = @transform_14, window_bounds = array<i64: 8, 8>}]} {
    %c0_i32 = arith.constant 0 : i32
    %0 = arith.cmpi eq, %arg1, %c0_i32 : i32
    %1 = arith.extui %0 : i1 to i32
    %c0_i32_0 = arith.constant 0 : i32
    %2 = arith.cmpi ne, %1, %c0_i32_0 : i32
    scf.if %2 {
      %cst_62 = arith.constant 0.000000e+00 : f32
      %135 = vector.broadcast %cst_62 : f32 to vector<8x8xf32>
      %c0_63 = arith.constant 0 : index
      %c0_64 = arith.constant 0 : index
      %136 = vector.load %arg16[%c0_63, %c0_64] : memref<8x8xf32, #tpu.memory_space<vmem>>, vector<8x8xf32>
      tpu.vector_store %arg16[%c0_63, %c0_64], %135 {strides = array<i32>} : memref<8x8xf32, #tpu.memory_space<vmem>>, vector<8x8xf32>,
    } else {
    }
    %c0 = arith.constant 0 : index
    %c0_1 = arith.constant 0 : index
    %3 = vector.load %arg2[%c0, %c0_1] : memref<8x128xf32, #tpu.memory_space<vmem>>, vector<8x128xf32>
    %4 = arith.truncf %3 : vector<8x128xf32> to vector<8x128xbf16>
    %c0_2 = arith.constant 0 : index
    %c0_3 = arith.constant 0 : index
    %5 = vector.load %arg4[%c0_2, %c0_3] : memref<128x128xbf16, #tpu.memory_space<vmem>>, vector<128x128xbf16>
    %cst = arith.constant dense<0.000000e+00> : vector<8x128xf32>
    %6 = tpu.matmul %4, %5, %cst {dimension_numbers = #tpu.dot_dimension_numbers<[1], [0], [0], [1], [0, 0, 1, 1], [], []>} : vector<8x128xbf16>, vector<128x128xbf16>, vector<8x128xf32> -> vector<8x128xf32>
    %c0_4 = arith.constant 0 : index
    %c0_5 = arith.constant 0 : index
    %7 = vector.load %arg5[%c0_4, %c0_5] : memref<1x128xf32, #tpu.memory_space<vmem>>, vector<1x128xf32>
    %8 = vector.broadcast %7 : vector<1x128xf32> to vector<8x128xf32>
    %9 = arith.addf %6, %8 : vector<8x128xf32>
    %cst_6 = arith.constant 0.000000e+00 : f32
    %10 = vector.broadcast %cst_6 : f32 to vector<8x128xf32>
    %11 = arith.maximumf %9, %10 : vector<8x128xf32>
    %12 = arith.truncf %11 : vector<8x128xf32> to vector<8x128xbf16>
    %c0_7 = arith.constant 0 : index
    %c0_8 = arith.constant 0 : index
    %13 = vector.load %arg8[%c0_7, %c0_8] : memref<128x256xbf16, #tpu.memory_space<vmem>>, vector<128x256xbf16>
    %cst_9 = arith.constant dense<0.000000e+00> : vector<8x256xf32>
    %14 = tpu.matmul %12, %13, %cst_9 {dimension_numbers = #tpu.dot_dimension_numbers<[1], [0], [0], [1], [0, 0, 1, 1], [], []>} : vector<8x128xbf16>, vector<128x256xbf16>, vector<8x256xf32> -> vector<8x256xf32>
    %c0_10 = arith.constant 0 : index
    %c0_11 = arith.constant 0 : index
    %15 = vector.load %arg9[%c0_10, %c0_11] : memref<1x256xf32, #tpu.memory_space<vmem>>, vector<1x256xf32>
    %16 = vector.broadcast %15 : vector<1x256xf32> to vector<8x256xf32>
    %17 = arith.addf %14, %16 : vector<8x256xf32>
    %cst_12 = arith.constant 0.000000e+00 : f32
    %18 = vector.broadcast %cst_12 : f32 to vector<8x256xf32>
    %19 = arith.maximumf %17, %18 : vector<8x256xf32>
    %20 = arith.truncf %19 : vector<8x256xf32> to vector<8x256xbf16>
    %c0_13 = arith.constant 0 : index
    %c0_14 = arith.constant 0 : index
    %21 = vector.load %arg10[%c0_13, %c0_14] : memref<256x128xbf16, #tpu.memory_space<vmem>>, vector<256x128xbf16>
    %cst_15 = arith.constant dense<0.000000e+00> : vector<8x128xf32>
    %22 = tpu.matmul %20, %21, %cst_15 {dimension_numbers = #tpu.dot_dimension_numbers<[1], [0], [0], [1], [0, 0, 1, 1], [], []>} : vector<8x256xbf16>, vector<256x128xbf16>, vector<8x128xf32> -> vector<8x128xf32>
    %c0_16 = arith.constant 0 : index
    %c0_17 = arith.constant 0 : index
    %23 = vector.load %arg11[%c0_16, %c0_17] : memref<1x128xf32, #tpu.memory_space<vmem>>, vector<1x128xf32>
    %24 = vector.broadcast %23 : vector<1x128xf32> to vector<8x128xf32>
    %25 = arith.addf %22, %24 : vector<8x128xf32>
    %cst_18 = arith.constant 0.000000e+00 : f32
    %26 = vector.broadcast %cst_18 : f32 to vector<8x128xf32>
    %27 = arith.maximumf %25, %26 : vector<8x128xf32>
    %28 = arith.truncf %27 : vector<8x128xf32> to vector<8x128xbf16>
    %c0_19 = arith.constant 0 : index
    %c0_20 = arith.constant 0 : index
    %29 = vector.load %arg12[%c0_19, %c0_20] : memref<128x8xbf16, #tpu.memory_space<vmem>>, vector<128x8xbf16>
    %cst_21 = arith.constant dense<0.000000e+00> : vector<8x8xf32>
    %30 = tpu.matmul %28, %29, %cst_21 {dimension_numbers = #tpu.dot_dimension_numbers<[1], [0], [0], [1], [0, 0, 1, 1], [], []>} : vector<8x128xbf16>, vector<128x8xbf16>, vector<8x8xf32> -> vector<8x8xf32>
    %c0_22 = arith.constant 0 : index
    %c0_23 = arith.constant 0 : index
    %31 = vector.load %arg13[%c0_22, %c0_23] : memref<1x8xf32, #tpu.memory_space<vmem>>, vector<1x8xf32>
    %32 = vector.broadcast %31 : vector<1x8xf32> to vector<8x8xf32>
    %33 = arith.addf %30, %32 : vector<8x8xf32>
    %34 = vector.extract_strided_slice %33 {offsets = [0, 0], sizes = [8, 1], strides = [1, 1]} : vector<8x8xf32> to vector<8x1xf32>
    %35 = vector.extract_strided_slice %33 {offsets = [0, 1], sizes = [8, 3], strides = [1, 1]} : vector<8x8xf32> to vector<8x3xf32>
    %36 = vector.extract_strided_slice %33 {offsets = [0, 4], sizes = [8, 2], strides = [1, 1]} : vector<8x8xf32> to vector<8x2xf32>
    %cst_24 = arith.constant 0.000000e+00 : f32
    %37 = vector.broadcast %cst_24 : f32 to vector<8x1xf32>
    %38 = arith.subf %37, %34 : vector<8x1xf32>
    %39 = math.exp %38 : vector<8x1xf32>
    %cst_25 = arith.constant 1.000000e+00 : f32
    %40 = vector.broadcast %cst_25 : f32 to vector<8x1xf32>
    %41 = arith.addf %40, %39 : vector<8x1xf32>
    %cst_26 = arith.constant 1.000000e+00 : f32
    %42 = vector.broadcast %cst_26 : f32 to vector<8x1xf32>
    %43 = arith.divf %42, %41 : vector<8x1xf32>
    %cst_27 = arith.constant dense<0xFF800000> : vector<8xf32>
    %44 = vector.multi_reduction <maximumf>, %35, %cst_27 [1] : vector<8x3xf32> to vector<8xf32>
    %45 = vector.shape_cast %44 : vector<8xf32> to vector<8x1xf32>
    %46 = vector.broadcast %45 : vector<8x1xf32> to vector<8x3xf32>
    %47 = arith.subf %35, %46 : vector<8x3xf32>
    %48 = math.exp %47 : vector<8x3xf32>
    %cst_28 = arith.constant dense<0.000000e+00> : vector<8xf32>
    %49 = vector.multi_reduction <add>, %48, %cst_28 [1] : vector<8x3xf32> to vector<8xf32>
    %50 = vector.shape_cast %49 : vector<8xf32> to vector<8x1xf32>
    %51 = vector.broadcast %50 : vector<8x1xf32> to vector<8x3xf32>
    %52 = arith.divf %48, %51 : vector<8x3xf32>
    %cst_29 = arith.constant 5.000000e-01 : f32
    %53 = vector.broadcast %cst_29 : f32 to vector<8x1xf32>
    %54 = arith.subf %43, %53 : vector<8x1xf32>
    %cst_30 = arith.constant 1.000000e-01 : f32
    %55 = vector.broadcast %cst_30 : f32 to vector<8x1xf32>
    %56 = arith.mulf %55, %54 : vector<8x1xf32>
    %cst_31 = arith.constant 1.000000e+00 : f32
    %57 = vector.broadcast %cst_31 : f32 to vector<8x1xf32>
    %58 = arith.addf %57, %56 : vector<8x1xf32>
    %59 = vector.extract_strided_slice %52 {offsets = [0, 0], sizes = [8, 1], strides = [1, 1]} : vector<8x3xf32> to vector<8x1xf32>
    %60 = vector.extract_strided_slice %52 {offsets = [0, 1], sizes = [8, 1], strides = [1, 1]} : vector<8x3xf32> to vector<8x1xf32>
    %61 = arith.subf %59, %60 : vector<8x1xf32>
    %cst_32 = arith.constant 1.000000e-01 : f32
    %62 = vector.broadcast %cst_32 : f32 to vector<8x1xf32>
    %63 = arith.mulf %62, %61 : vector<8x1xf32>
    %cst_33 = arith.constant 1.000000e+00 : f32
    %64 = vector.broadcast %cst_33 : f32 to vector<8x1xf32>
    %65 = arith.addf %64, %63 : vector<8x1xf32>
    %66 = vector.extract_strided_slice %36 {offsets = [0, 0], sizes = [8, 1], strides = [1, 1]} : vector<8x2xf32> to vector<8x1xf32>
    %67 = vector.extract_strided_slice %36 {offsets = [0, 1], sizes = [8, 1], strides = [1, 1]} : vector<8x2xf32> to vector<8x1xf32>
    %68 = arith.addf %66, %67 : vector<8x1xf32>
    %cst_34 = arith.constant 5.000000e-01 : f32
    %69 = vector.broadcast %cst_34 : f32 to vector<8x1xf32>
    %70 = arith.mulf %69, %68 : vector<8x1xf32>
    %cst_35 = arith.constant 5.000000e-01 : f32
    %71 = vector.broadcast %cst_35 : f32 to vector<8x1xf32>
    %72 = arith.subf %70, %71 : vector<8x1xf32>
    %cst_36 = arith.constant 1.000000e-01 : f32
    %73 = vector.broadcast %cst_36 : f32 to vector<8x1xf32>
    %74 = arith.mulf %73, %72 : vector<8x1xf32>
    %cst_37 = arith.constant 1.000000e+00 : f32
    %75 = vector.broadcast %cst_37 : f32 to vector<8x1xf32>
    %76 = arith.addf %75, %74 : vector<8x1xf32>
    %77 = arith.mulf %58, %65 : vector<8x1xf32>
    %78 = arith.mulf %77, %76 : vector<8x1xf32>
    %cst_38 = arith.constant 1.000000e-01 : f32
    %79 = vector.broadcast %cst_38 : f32 to vector<8x1xf32>
    %80 = arith.mulf %79, %78 : vector<8x1xf32>
    %cst_39 = arith.constant 0.899999976 : f32
    %81 = vector.broadcast %cst_39 : f32 to vector<8x1xf32>
    %82 = arith.addf %81, %80 : vector<8x1xf32>
    %83 = vector.broadcast %82 : vector<8x1xf32> to vector<8x128xf32>
    %84 = arith.mulf %11, %83 : vector<8x128xf32>
    %c0_40 = arith.constant 0 : index
    %c0_41 = arith.constant 0 : index
    %85 = vector.load %arg15[%c0_40, %c0_41] : memref<8x128xf32, #tpu.memory_space<vmem>>, vector<8x128xf32>
    tpu.vector_store %arg15[%c0_40, %c0_41], %84 {strides = array<i32>} : memref<8x128xf32, #tpu.memory_space<vmem>>, vector<8x128xf32>,
    %86 = arith.truncf %84 : vector<8x128xf32> to vector<8x128xbf16>
    %c0_42 = arith.constant 0 : index
    %c0_43 = arith.constant 0 : index
    %87 = vector.load %arg6[%c0_42, %c0_43] : memref<128x128xbf16, #tpu.memory_space<vmem>>, vector<128x128xbf16>
    %cst_44 = arith.constant dense<0.000000e+00> : vector<8x128xf32>
    %88 = tpu.matmul %86, %87, %cst_44 {dimension_numbers = #tpu.dot_dimension_numbers<[1], [0], [0], [1], [0, 0, 1, 1], [], []>} : vector<8x128xbf16>, vector<128x128xbf16>, vector<8x128xf32> -> vector<8x128xf32>
    %c0_45 = arith.constant 0 : index
    %c0_46 = arith.constant 0 : index
    %89 = vector.load %arg7[%c0_45, %c0_46] : memref<1x128xf32, #tpu.memory_space<vmem>>, vector<1x128xf32>
    %90 = vector.broadcast %89 : vector<1x128xf32> to vector<8x128xf32>
    %91 = arith.addf %88, %90 : vector<8x128xf32>
    %c0_47 = arith.constant 0 : index
    %c0_48 = arith.constant 0 : index
    %92 = vector.load %arg14[%c0_47, %c0_48] : memref<8x128xf32, #tpu.memory_space<vmem>>, vector<8x128xf32>
    tpu.vector_store %arg14[%c0_47, %c0_48], %91 {strides = array<i32>} : memref<8x128xf32, #tpu.memory_space<vmem>>, vector<8x128xf32>,
    %93 = tpu.iota {dimensions = array<i32: 0>} : vector<8x1xi32>
    %c1_i32 = arith.constant 1 : i32
    %94 = arith.muli %arg0, %c1_i32 : i32
    %95 = arith.addi %94, %arg1 : i32
    %c8_i32 = arith.constant 8 : i32
    %96 = arith.muli %95, %c8_i32 : i32
    %97 = vector.broadcast %96 : i32 to vector<8x1xi32>
    %98 = arith.addi %93, %97 : vector<8x1xi32>
    %c16_i32 = arith.constant 16 : i32
    %99 = vector.broadcast %c16_i32 : i32 to vector<8x1xi32>
    %100 = arith.cmpi slt, %98, %99 : vector<8x1xi32>
    %101 = arith.extui %100 : vector<8x1xi1> to vector<8x1xi32>
    %102 = arith.sitofp %101 : vector<8x1xi32> to vector<8x1xf32>
    %c0_49 = arith.constant 0 : index
    %c0_50 = arith.constant 0 : index
    %103 = vector.load %arg3[%c0_49, %c0_50] : memref<8x8xf32, #tpu.memory_space<vmem>>, vector<8x8xf32>
    %104 = vector.extract_strided_slice %103 {offsets = [0, 0], sizes = [8, 1], strides = [1, 1]} : vector<8x8xf32> to vector<8x1xf32>
    %105 = vector.extract_strided_slice %103 {offsets = [0, 1], sizes = [8, 3], strides = [1, 1]} : vector<8x8xf32> to vector<8x3xf32>
    %106 = vector.extract_strided_slice %103 {offsets = [0, 4], sizes = [8, 2], strides = [1, 1]} : vector<8x8xf32> to vector<8x2xf32>
    %107 = arith.subf %43, %104 : vector<8x1xf32>
    %108 = arith.subf %36, %106 : vector<8x2xf32>
    %cst_51 = arith.constant dense<0xFF800000> : vector<8xf32>
    %109 = vector.multi_reduction <maximumf>, %52, %cst_51 [1] : vector<8x3xf32> to vector<8xf32>
    %110 = vector.shape_cast %109 : vector<8xf32> to vector<8x1xf32>
    %111 = vector.broadcast %110 : vector<8x1xf32> to vector<8x3xf32>
    %112 = arith.subf %52, %111 : vector<8x3xf32>
    %113 = math.exp %112 : vector<8x3xf32>
    %cst_52 = arith.constant dense<0.000000e+00> : vector<8xf32>
    %114 = vector.multi_reduction <add>, %113, %cst_52 [1] : vector<8x3xf32> to vector<8xf32>
    %115 = vector.shape_cast %114 : vector<8xf32> to vector<8x1xf32>
    %116 = math.log %115 : vector<8x1xf32>
    %117 = arith.addf %116, %110 : vector<8x1xf32>
    %118 = arith.mulf %52, %105 : vector<8x3xf32>
    %cst_53 = arith.constant dense<0.000000e+00> : vector<8xf32>
    %119 = vector.multi_reduction <add>, %118, %cst_53 [1] : vector<8x3xf32> to vector<8xf32>
    %120 = vector.shape_cast %119 : vector<8xf32> to vector<8x1xf32>
    %121 = arith.mulf %107, %107 : vector<8x1xf32>
    %122 = arith.subf %117, %120 : vector<8x1xf32>
    %123 = arith.mulf %108, %108 : vector<8x2xf32>
    %cst_54 = arith.constant dense<0.000000e+00> : vector<8xf32>
    %124 = vector.multi_reduction <add>, %123, %cst_54 [1] : vector<8x2xf32> to vector<8xf32>
    %125 = vector.shape_cast %124 : vector<8xf32> to vector<8x1xf32>
    %cst_55 = arith.constant 0.000000e+00 : f32
    %126 = vector.broadcast %cst_55 : f32 to vector<8x5xf32>
    %127 = tpu.concatenate %121, %122, %125, %126 in 1 : vector<8x1xf32>, vector<8x1xf32>, vector<8x1xf32>, vector<8x5xf32> -> vector<8x8xf32>
    %128 = vector.broadcast %102 : vector<8x1xf32> to vector<8x8xf32>
    %129 = arith.mulf %128, %127 : vector<8x8xf32>
    %c0_56 = arith.constant 0 : index
    %c0_57 = arith.constant 0 : index
    %130 = vector.load %arg16[%c0_56, %c0_57] : memref<8x8xf32, #tpu.memory_space<vmem>>, vector<8x8xf32>
    %cst_58 = arith.constant 1.000000e+00 : f32
    %131 = vector.broadcast %cst_58 : f32 to vector<8x8xf32>
    %cst_59 = arith.constant dense<0.000000e+00> : vector<8x8xf32>
    %132 = tpu.matmul %131, %129, %cst_59 {dimension_numbers = #tpu.dot_dimension_numbers<[1], [0], [0], [1], [0, 0, 1, 1], [], []>} : vector<8x8xf32>, vector<8x8xf32>, vector<8x8xf32> -> vector<8x8xf32>
    %133 = arith.addf %130, %132 : vector<8x8xf32>
    %c0_60 = arith.constant 0 : index
    %c0_61 = arith.constant 0 : index
    %134 = vector.load %arg16[%c0_60, %c0_61] : memref<8x8xf32, #tpu.memory_space<vmem>>, vector<8x8xf32>
    tpu.vector_store %arg16[%c0_60, %c0_61], %133 {strides = array<i32>} : memref<8x8xf32, #tpu.memory_space<vmem>>, vector<8x8xf32>,
    return
  }
  func.func @transform_0(%arg0: i32, %arg1: i32) -> (i32, i32) {
    %c1_i32 = arith.constant 1 : i32
    %0 = arith.muli %arg0, %c1_i32 : i32
    %1 = arith.addi %0, %arg1 : i32
    %c0_i32 = arith.constant 0 : i32
    %c0_i32_0 = arith.constant 0 : i32
    return %1, %c0_i32 : i32, i32
  }
  func.func @transform_1(%arg0: i32, %arg1: i32) -> (i32, i32) {
    %c1_i32 = arith.constant 1 : i32
    %0 = arith.muli %arg0, %c1_i32 : i32
    %1 = arith.addi %0, %arg1 : i32
    %c0_i32 = arith.constant 0 : i32
    %c0_i32_0 = arith.constant 0 : i32
    return %1, %c0_i32 : i32, i32
  }
  func.func @transform_2(%arg0: i32, %arg1: i32) -> (i32, i32) {
    %c0_i32 = arith.constant 0 : i32
    %c0_i32_0 = arith.constant 0 : i32
    %c0_i32_1 = arith.constant 0 : i32
    return %c0_i32, %c0_i32_0 : i32, i32
  }
  func.func @transform_3(%arg0: i32, %arg1: i32) -> (i32, i32) {
    %c0_i32 = arith.constant 0 : i32
    %c0_i32_0 = arith.constant 0 : i32
    %c0_i32_1 = arith.constant 0 : i32
    return %c0_i32, %c0_i32_0 : i32, i32
  }
  func.func @transform_4(%arg0: i32, %arg1: i32) -> (i32, i32) {
    %c0_i32 = arith.constant 0 : i32
    %c0_i32_0 = arith.constant 0 : i32
    %c0_i32_1 = arith.constant 0 : i32
    return %c0_i32, %c0_i32_0 : i32, i32
  }
  func.func @transform_5(%arg0: i32, %arg1: i32) -> (i32, i32) {
    %c0_i32 = arith.constant 0 : i32
    %c0_i32_0 = arith.constant 0 : i32
    %c0_i32_1 = arith.constant 0 : i32
    return %c0_i32, %c0_i32_0 : i32, i32
  }
  func.func @transform_6(%arg0: i32, %arg1: i32) -> (i32, i32) {
    %c0_i32 = arith.constant 0 : i32
    %c0_i32_0 = arith.constant 0 : i32
    %c0_i32_1 = arith.constant 0 : i32
    return %c0_i32, %c0_i32_0 : i32, i32
  }
  func.func @transform_7(%arg0: i32, %arg1: i32) -> (i32, i32) {
    %c0_i32 = arith.constant 0 : i32
    %c0_i32_0 = arith.constant 0 : i32
    %c0_i32_1 = arith.constant 0 : i32
    return %c0_i32, %c0_i32_0 : i32, i32
  }
  func.func @transform_8(%arg0: i32, %arg1: i32) -> (i32, i32) {
    %c0_i32 = arith.constant 0 : i32
    %c0_i32_0 = arith.constant 0 : i32
    %c0_i32_1 = arith.constant 0 : i32
    return %c0_i32, %c0_i32_0 : i32, i32
  }
  func.func @transform_9(%arg0: i32, %arg1: i32) -> (i32, i32) {
    %c0_i32 = arith.constant 0 : i32
    %c0_i32_0 = arith.constant 0 : i32
    %c0_i32_1 = arith.constant 0 : i32
    return %c0_i32, %c0_i32_0 : i32, i32
  }
  func.func @transform_10(%arg0: i32, %arg1: i32) -> (i32, i32) {
    %c0_i32 = arith.constant 0 : i32
    %c0_i32_0 = arith.constant 0 : i32
    %c0_i32_1 = arith.constant 0 : i32
    return %c0_i32, %c0_i32_0 : i32, i32
  }
  func.func @transform_11(%arg0: i32, %arg1: i32) -> (i32, i32) {
    %c0_i32 = arith.constant 0 : i32
    %c0_i32_0 = arith.constant 0 : i32
    %c0_i32_1 = arith.constant 0 : i32
    return %c0_i32, %c0_i32_0 : i32, i32
  }
  func.func @transform_12(%arg0: i32, %arg1: i32) -> (i32, i32) {
    %c1_i32 = arith.constant 1 : i32
    %0 = arith.muli %arg0, %c1_i32 : i32
    %1 = arith.addi %0, %arg1 : i32
    %c0_i32 = arith.constant 0 : i32
    %c0_i32_0 = arith.constant 0 : i32
    return %1, %c0_i32 : i32, i32
  }
  func.func @transform_13(%arg0: i32, %arg1: i32) -> (i32, i32) {
    %c1_i32 = arith.constant 1 : i32
    %0 = arith.muli %arg0, %c1_i32 : i32
    %1 = arith.addi %0, %arg1 : i32
    %c0_i32 = arith.constant 0 : i32
    %c0_i32_0 = arith.constant 0 : i32
    return %1, %c0_i32 : i32, i32
  }
  func.func @transform_14(%arg0: i32, %arg1: i32) -> (i32, i32) {
    %c0_i32 = arith.constant 0 : i32
    %c0_i32_0 = arith.constant 0 : i32
    return %arg0, %c0_i32 : i32, i32
  }
}

module attributes {stable_mosaic.version = 11 : i64} {
  func.func @sae_fused_kernel(%arg0: i32, %arg1: i32, %arg2: memref<8x128xf32, #tpu.memory_space<vmem>>, %arg3: memref<8x8xf32, #tpu.memory_space<vmem>>, %arg4: memref<128x128xbf16, #tpu.memory_space<vmem>>, %arg5: memref<1x128xf32, #tpu.memory_space<vmem>>, %arg6: memref<128x128xbf16, #tpu.memory_space<vmem>>, %arg7: memref<1x128xf32, #tpu.memory_space<vmem>>, %arg8: memref<128x256xbf16, #tpu.memory_space<vmem>>, %arg9: memref<1x256xf32, #tpu.memory_space<vmem>>, %arg10: memref<256x128xbf16, #tpu.memory_space<vmem>>, %arg11: memref<1x128xf32, #tpu.memory_space<vmem>>, %arg12: memref<128x8xbf16, #tpu.memory_space<vmem>>, %arg13: memref<1x8xf32, #tpu.memory_space<vmem>>, %arg14: memref<8x128xf32, #tpu.memory_space<vmem>>, %arg15: memref<8x128xf32, #tpu.memory_space<vmem>>, %arg16: memref<8x8xf32, #tpu.memory_space<vmem>>) attributes {dimension_semantics = [#tpu.dimension_semantics<parallel>, #tpu.dimension_semantics<arbitrary>], iteration_bounds = array<i64: 2, 1>, scalar_prefetch = 0 : i64, scratch_operands = 0 : i64, tpu.core_type = #tpu.core_type<tc>, window_params = [{transform_indices = @transform_0, window_bounds = array<i64: 8, 128>}, {transform_indices = @transform_1, window_bounds = array<i64: 8, 8>}, {pipeline_mode = #tpu.pipeline_mode<synchronous>, transform_indices = @transform_2, window_bounds = array<i64: 128, 128>}, {pipeline_mode = #tpu.pipeline_mode<synchronous>, transform_indices = @transform_3, window_bounds = array<i64: 1, 128>}, {pipeline_mode = #tpu.pipeline_mode<synchronous>, transform_indices = @transform_4, window_bounds = array<i64: 128, 128>}, {pipeline_mode = #tpu.pipeline_mode<synchronous>, transform_indices = @transform_5, window_bounds = array<i64: 1, 128>}, {pipeline_mode = #tpu.pipeline_mode<synchronous>, transform_indices = @transform_6, window_bounds = array<i64: 128, 256>}, {pipeline_mode = #tpu.pipeline_mode<synchronous>, transform_indices = @transform_7, window_bounds = array<i64: 1, 256>}, {pipeline_mode = #tpu.pipeline_mode<synchronous>, transform_indices = @transform_8, window_bounds = array<i64: 256, 128>}, {pipeline_mode = #tpu.pipeline_mode<synchronous>, transform_indices = @transform_9, window_bounds = array<i64: 1, 128>}, {pipeline_mode = #tpu.pipeline_mode<synchronous>, transform_indices = @transform_10, window_bounds = array<i64: 128, 8>}, {pipeline_mode = #tpu.pipeline_mode<synchronous>, transform_indices = @transform_11, window_bounds = array<i64: 1, 8>}, {transform_indices = @transform_12, window_bounds = array<i64: 8, 128>}, {transform_indices = @transform_13, window_bounds = array<i64: 8, 128>}, {transform_indices = @transform_14, window_bounds = array<i64: 8, 8>}]} {
    %c0_i32 = arith.constant 0 : i32
    %0 = arith.cmpi eq, %arg1, %c0_i32 : i32
    %1 = arith.extui %0 : i1 to i32
    %c0_i32_0 = arith.constant 0 : i32
    %2 = arith.cmpi ne, %1, %c0_i32_0 : i32
    scf.if %2 {
      %cst_62 = arith.constant 0.000000e+00 : f32
      %135 = vector.broadcast %cst_62 : f32 to vector<8x8xf32>
      %c0_63 = arith.constant 0 : index
      %c0_64 = arith.constant 0 : index
      %136 = vector.load %arg16[%c0_63, %c0_64] : memref<8x8xf32, #tpu.memory_space<vmem>>, vector<8x8xf32>
      tpu.vector_store %arg16[%c0_63, %c0_64], %135 {strides = array<i32>} : memref<8x8xf32, #tpu.memory_space<vmem>>, vector<8x8xf32>,
    } else {
    }
    %c0 = arith.constant 0 : index
    %c0_1 = arith.constant 0 : index
    %3 = vector.load %arg2[%c0, %c0_1] : memref<8x128xf32, #tpu.memory_space<vmem>>, vector<8x128xf32>
    %4 = arith.truncf %3 : vector<8x128xf32> to vector<8x128xbf16>
    %c0_2 = arith.constant 0 : index
    %c0_3 = arith.constant 0 : index
    %5 = vector.load %arg4[%c0_2, %c0_3] : memref<128x128xbf16, #tpu.memory_space<vmem>>, vector<128x128xbf16>
    %cst = arith.constant dense<0.000000e+00> : vector<8x128xf32>
    %6 = tpu.matmul %4, %5, %cst {dimension_numbers = #tpu.dot_dimension_numbers<[1], [0], [0], [1], [0, 0, 1, 1], [], []>} : vector<8x128xbf16>, vector<128x128xbf16>, vector<8x128xf32> -> vector<8x128xf32>
    %c0_4 = arith.constant 0 : index
    %c0_5 = arith.constant 0 : index
    %7 = vector.load %arg5[%c0_4, %c0_5] : memref<1x128xf32, #tpu.memory_space<vmem>>, vector<1x128xf32>
    %8 = vector.broadcast %7 : vector<1x128xf32> to vector<8x128xf32>
    %9 = arith.addf %6, %8 : vector<8x128xf32>
    %cst_6 = arith.constant 0.000000e+00 : f32
    %10 = vector.broadcast %cst_6 : f32 to vector<8x128xf32>
    %11 = arith.maximumf %9, %10 : vector<8x128xf32>
    %12 = arith.truncf %11 : vector<8x128xf32> to vector<8x128xbf16>
    %c0_7 = arith.constant 0 : index
    %c0_8 = arith.constant 0 : index
    %13 = vector.load %arg8[%c0_7, %c0_8] : memref<128x256xbf16, #tpu.memory_space<vmem>>, vector<128x256xbf16>
    %cst_9 = arith.constant dense<0.000000e+00> : vector<8x256xf32>
    %14 = tpu.matmul %12, %13, %cst_9 {dimension_numbers = #tpu.dot_dimension_numbers<[1], [0], [0], [1], [0, 0, 1, 1], [], []>} : vector<8x128xbf16>, vector<128x256xbf16>, vector<8x256xf32> -> vector<8x256xf32>
    %c0_10 = arith.constant 0 : index
    %c0_11 = arith.constant 0 : index
    %15 = vector.load %arg9[%c0_10, %c0_11] : memref<1x256xf32, #tpu.memory_space<vmem>>, vector<1x256xf32>
    %16 = vector.broadcast %15 : vector<1x256xf32> to vector<8x256xf32>
    %17 = arith.addf %14, %16 : vector<8x256xf32>
    %cst_12 = arith.constant 0.000000e+00 : f32
    %18 = vector.broadcast %cst_12 : f32 to vector<8x256xf32>
    %19 = arith.maximumf %17, %18 : vector<8x256xf32>
    %20 = arith.truncf %19 : vector<8x256xf32> to vector<8x256xbf16>
    %c0_13 = arith.constant 0 : index
    %c0_14 = arith.constant 0 : index
    %21 = vector.load %arg10[%c0_13, %c0_14] : memref<256x128xbf16, #tpu.memory_space<vmem>>, vector<256x128xbf16>
    %cst_15 = arith.constant dense<0.000000e+00> : vector<8x128xf32>
    %22 = tpu.matmul %20, %21, %cst_15 {dimension_numbers = #tpu.dot_dimension_numbers<[1], [0], [0], [1], [0, 0, 1, 1], [], []>} : vector<8x256xbf16>, vector<256x128xbf16>, vector<8x128xf32> -> vector<8x128xf32>
    %c0_16 = arith.constant 0 : index
    %c0_17 = arith.constant 0 : index
    %23 = vector.load %arg11[%c0_16, %c0_17] : memref<1x128xf32, #tpu.memory_space<vmem>>, vector<1x128xf32>
    %24 = vector.broadcast %23 : vector<1x128xf32> to vector<8x128xf32>
    %25 = arith.addf %22, %24 : vector<8x128xf32>
    %cst_18 = arith.constant 0.000000e+00 : f32
    %26 = vector.broadcast %cst_18 : f32 to vector<8x128xf32>
    %27 = arith.maximumf %25, %26 : vector<8x128xf32>
    %28 = arith.truncf %27 : vector<8x128xf32> to vector<8x128xbf16>
    %c0_19 = arith.constant 0 : index
    %c0_20 = arith.constant 0 : index
    %29 = vector.load %arg12[%c0_19, %c0_20] : memref<128x8xbf16, #tpu.memory_space<vmem>>, vector<128x8xbf16>
    %cst_21 = arith.constant dense<0.000000e+00> : vector<8x8xf32>
    %30 = tpu.matmul %28, %29, %cst_21 {dimension_numbers = #tpu.dot_dimension_numbers<[1], [0], [0], [1], [0, 0, 1, 1], [], []>} : vector<8x128xbf16>, vector<128x8xbf16>, vector<8x8xf32> -> vector<8x8xf32>
    %c0_22 = arith.constant 0 : index
    %c0_23 = arith.constant 0 : index
    %31 = vector.load %arg13[%c0_22, %c0_23] : memref<1x8xf32, #tpu.memory_space<vmem>>, vector<1x8xf32>
    %32 = vector.broadcast %31 : vector<1x8xf32> to vector<8x8xf32>
    %33 = arith.addf %30, %32 : vector<8x8xf32>
    %34 = vector.extract_strided_slice %33 {offsets = [0, 0], sizes = [8, 1], strides = [1, 1]} : vector<8x8xf32> to vector<8x1xf32>
    %35 = vector.extract_strided_slice %33 {offsets = [0, 1], sizes = [8, 3], strides = [1, 1]} : vector<8x8xf32> to vector<8x3xf32>
    %36 = vector.extract_strided_slice %33 {offsets = [0, 4], sizes = [8, 2], strides = [1, 1]} : vector<8x8xf32> to vector<8x2xf32>
    %cst_24 = arith.constant 0.000000e+00 : f32
    %37 = vector.broadcast %cst_24 : f32 to vector<8x1xf32>
    %38 = arith.subf %37, %34 : vector<8x1xf32>
    %39 = math.exp %38 : vector<8x1xf32>
    %cst_25 = arith.constant 1.000000e+00 : f32
    %40 = vector.broadcast %cst_25 : f32 to vector<8x1xf32>
    %41 = arith.addf %40, %39 : vector<8x1xf32>
    %cst_26 = arith.constant 1.000000e+00 : f32
    %42 = vector.broadcast %cst_26 : f32 to vector<8x1xf32>
    %43 = arith.divf %42, %41 : vector<8x1xf32>
    %cst_27 = arith.constant dense<0xFF800000> : vector<8xf32>
    %44 = vector.multi_reduction <maximumf>, %35, %cst_27 [1] : vector<8x3xf32> to vector<8xf32>
    %45 = vector.shape_cast %44 : vector<8xf32> to vector<8x1xf32>
    %46 = vector.broadcast %45 : vector<8x1xf32> to vector<8x3xf32>
    %47 = arith.subf %35, %46 : vector<8x3xf32>
    %48 = math.exp %47 : vector<8x3xf32>
    %cst_28 = arith.constant dense<0.000000e+00> : vector<8xf32>
    %49 = vector.multi_reduction <add>, %48, %cst_28 [1] : vector<8x3xf32> to vector<8xf32>
    %50 = vector.shape_cast %49 : vector<8xf32> to vector<8x1xf32>
    %51 = vector.broadcast %50 : vector<8x1xf32> to vector<8x3xf32>
    %52 = arith.divf %48, %51 : vector<8x3xf32>
    %cst_29 = arith.constant 5.000000e-01 : f32
    %53 = vector.broadcast %cst_29 : f32 to vector<8x1xf32>
    %54 = arith.subf %43, %53 : vector<8x1xf32>
    %cst_30 = arith.constant 1.000000e-01 : f32
    %55 = vector.broadcast %cst_30 : f32 to vector<8x1xf32>
    %56 = arith.mulf %55, %54 : vector<8x1xf32>
    %cst_31 = arith.constant 1.000000e+00 : f32
    %57 = vector.broadcast %cst_31 : f32 to vector<8x1xf32>
    %58 = arith.addf %57, %56 : vector<8x1xf32>
    %59 = vector.extract_strided_slice %52 {offsets = [0, 0], sizes = [8, 1], strides = [1, 1]} : vector<8x3xf32> to vector<8x1xf32>
    %60 = vector.extract_strided_slice %52 {offsets = [0, 1], sizes = [8, 1], strides = [1, 1]} : vector<8x3xf32> to vector<8x1xf32>
    %61 = arith.subf %59, %60 : vector<8x1xf32>
    %cst_32 = arith.constant 1.000000e-01 : f32
    %62 = vector.broadcast %cst_32 : f32 to vector<8x1xf32>
    %63 = arith.mulf %62, %61 : vector<8x1xf32>
    %cst_33 = arith.constant 1.000000e+00 : f32
    %64 = vector.broadcast %cst_33 : f32 to vector<8x1xf32>
    %65 = arith.addf %64, %63 : vector<8x1xf32>
    %66 = vector.extract_strided_slice %36 {offsets = [0, 0], sizes = [8, 1], strides = [1, 1]} : vector<8x2xf32> to vector<8x1xf32>
    %67 = vector.extract_strided_slice %36 {offsets = [0, 1], sizes = [8, 1], strides = [1, 1]} : vector<8x2xf32> to vector<8x1xf32>
    %68 = arith.addf %66, %67 : vector<8x1xf32>
    %cst_34 = arith.constant 5.000000e-01 : f32
    %69 = vector.broadcast %cst_34 : f32 to vector<8x1xf32>
    %70 = arith.mulf %69, %68 : vector<8x1xf32>
    %cst_35 = arith.constant 5.000000e-01 : f32
    %71 = vector.broadcast %cst_35 : f32 to vector<8x1xf32>
    %72 = arith.subf %70, %71 : vector<8x1xf32>
    %cst_36 = arith.constant 1.000000e-01 : f32
    %73 = vector.broadcast %cst_36 : f32 to vector<8x1xf32>
    %74 = arith.mulf %73, %72 : vector<8x1xf32>
    %cst_37 = arith.constant 1.000000e+00 : f32
    %75 = vector.broadcast %cst_37 : f32 to vector<8x1xf32>
    %76 = arith.addf %75, %74 : vector<8x1xf32>
    %77 = arith.mulf %58, %65 : vector<8x1xf32>
    %78 = arith.mulf %77, %76 : vector<8x1xf32>
    %cst_38 = arith.constant 1.000000e-01 : f32
    %79 = vector.broadcast %cst_38 : f32 to vector<8x1xf32>
    %80 = arith.mulf %79, %78 : vector<8x1xf32>
    %cst_39 = arith.constant 0.899999976 : f32
    %81 = vector.broadcast %cst_39 : f32 to vector<8x1xf32>
    %82 = arith.addf %81, %80 : vector<8x1xf32>
    %83 = vector.broadcast %82 : vector<8x1xf32> to vector<8x128xf32>
    %84 = arith.mulf %11, %83 : vector<8x128xf32>
    %c0_40 = arith.constant 0 : index
    %c0_41 = arith.constant 0 : index
    %85 = vector.load %arg15[%c0_40, %c0_41] : memref<8x128xf32, #tpu.memory_space<vmem>>, vector<8x128xf32>
    tpu.vector_store %arg15[%c0_40, %c0_41], %84 {strides = array<i32>} : memref<8x128xf32, #tpu.memory_space<vmem>>, vector<8x128xf32>,
    %86 = arith.truncf %84 : vector<8x128xf32> to vector<8x128xbf16>
    %c0_42 = arith.constant 0 : index
    %c0_43 = arith.constant 0 : index
    %87 = vector.load %arg6[%c0_42, %c0_43] : memref<128x128xbf16, #tpu.memory_space<vmem>>, vector<128x128xbf16>
    %cst_44 = arith.constant dense<0.000000e+00> : vector<8x128xf32>
    %88 = tpu.matmul %86, %87, %cst_44 {dimension_numbers = #tpu.dot_dimension_numbers<[1], [0], [0], [1], [0, 0, 1, 1], [], []>} : vector<8x128xbf16>, vector<128x128xbf16>, vector<8x128xf32> -> vector<8x128xf32>
    %c0_45 = arith.constant 0 : index
    %c0_46 = arith.constant 0 : index
    %89 = vector.load %arg7[%c0_45, %c0_46] : memref<1x128xf32, #tpu.memory_space<vmem>>, vector<1x128xf32>
    %90 = vector.broadcast %89 : vector<1x128xf32> to vector<8x128xf32>
    %91 = arith.addf %88, %90 : vector<8x128xf32>
    %c0_47 = arith.constant 0 : index
    %c0_48 = arith.constant 0 : index
    %92 = vector.load %arg14[%c0_47, %c0_48] : memref<8x128xf32, #tpu.memory_space<vmem>>, vector<8x128xf32>
    tpu.vector_store %arg14[%c0_47, %c0_48], %91 {strides = array<i32>} : memref<8x128xf32, #tpu.memory_space<vmem>>, vector<8x128xf32>,
    %93 = tpu.iota {dimensions = array<i32: 0>} : vector<8x1xi32>
    %c1_i32 = arith.constant 1 : i32
    %94 = arith.muli %arg0, %c1_i32 : i32
    %95 = arith.addi %94, %arg1 : i32
    %c8_i32 = arith.constant 8 : i32
    %96 = arith.muli %95, %c8_i32 : i32
    %97 = vector.broadcast %96 : i32 to vector<8x1xi32>
    %98 = arith.addi %93, %97 : vector<8x1xi32>
    %c16_i32 = arith.constant 16 : i32
    %99 = vector.broadcast %c16_i32 : i32 to vector<8x1xi32>
    %100 = arith.cmpi slt, %98, %99 : vector<8x1xi32>
    %101 = arith.extui %100 : vector<8x1xi1> to vector<8x1xi32>
    %102 = arith.sitofp %101 : vector<8x1xi32> to vector<8x1xf32>
    %c0_49 = arith.constant 0 : index
    %c0_50 = arith.constant 0 : index
    %103 = vector.load %arg3[%c0_49, %c0_50] : memref<8x8xf32, #tpu.memory_space<vmem>>, vector<8x8xf32>
    %104 = vector.extract_strided_slice %103 {offsets = [0, 0], sizes = [8, 1], strides = [1, 1]} : vector<8x8xf32> to vector<8x1xf32>
    %105 = vector.extract_strided_slice %103 {offsets = [0, 1], sizes = [8, 3], strides = [1, 1]} : vector<8x8xf32> to vector<8x3xf32>
    %106 = vector.extract_strided_slice %103 {offsets = [0, 4], sizes = [8, 2], strides = [1, 1]} : vector<8x8xf32> to vector<8x2xf32>
    %107 = arith.subf %43, %104 : vector<8x1xf32>
    %108 = arith.subf %36, %106 : vector<8x2xf32>
    %cst_51 = arith.constant dense<0xFF800000> : vector<8xf32>
    %109 = vector.multi_reduction <maximumf>, %52, %cst_51 [1] : vector<8x3xf32> to vector<8xf32>
    %110 = vector.shape_cast %109 : vector<8xf32> to vector<8x1xf32>
    %111 = vector.broadcast %110 : vector<8x1xf32> to vector<8x3xf32>
    %112 = arith.subf %52, %111 : vector<8x3xf32>
    %113 = math.exp %112 : vector<8x3xf32>
    %cst_52 = arith.constant dense<0.000000e+00> : vector<8xf32>
    %114 = vector.multi_reduction <add>, %113, %cst_52 [1] : vector<8x3xf32> to vector<8xf32>
    %115 = vector.shape_cast %114 : vector<8xf32> to vector<8x1xf32>
    %116 = math.log %115 : vector<8x1xf32>
    %117 = arith.addf %116, %110 : vector<8x1xf32>
    %118 = arith.mulf %52, %105 : vector<8x3xf32>
    %cst_53 = arith.constant dense<0.000000e+00> : vector<8xf32>
    %119 = vector.multi_reduction <add>, %118, %cst_53 [1] : vector<8x3xf32> to vector<8xf32>
    %120 = vector.shape_cast %119 : vector<8xf32> to vector<8x1xf32>
    %121 = arith.mulf %107, %107 : vector<8x1xf32>
    %122 = arith.subf %117, %120 : vector<8x1xf32>
    %123 = arith.mulf %108, %108 : vector<8x2xf32>
    %cst_54 = arith.constant dense<0.000000e+00> : vector<8xf32>
    %124 = vector.multi_reduction <add>, %123, %cst_54 [1] : vector<8x2xf32> to vector<8xf32>
    %125 = vector.shape_cast %124 : vector<8xf32> to vector<8x1xf32>
    %cst_55 = arith.constant 0.000000e+00 : f32
    %126 = vector.broadcast %cst_55 : f32 to vector<8x5xf32>
    %127 = tpu.concatenate %121, %122, %125, %126 in 1 : vector<8x1xf32>, vector<8x1xf32>, vector<8x1xf32>, vector<8x5xf32> -> vector<8x8xf32>
    %128 = vector.broadcast %102 : vector<8x1xf32> to vector<8x8xf32>
    %129 = arith.mulf %128, %127 : vector<8x8xf32>
    %c0_56 = arith.constant 0 : index
    %c0_57 = arith.constant 0 : index
    %130 = vector.load %arg16[%c0_56, %c0_57] : memref<8x8xf32, #tpu.memory_space<vmem>>, vector<8x8xf32>
    %cst_58 = arith.constant 1.000000e+00 : f32
    %131 = vector.broadcast %cst_58 : f32 to vector<8x8xf32>
    %cst_59 = arith.constant dense<0.000000e+00> : vector<8x8xf32>
    %132 = tpu.matmul %131, %129, %cst_59 {dimension_numbers = #tpu.dot_dimension_numbers<[1], [0], [0], [1], [0, 0, 1, 1], [], []>} : vector<8x8xf32>, vector<8x8xf32>, vector<8x8xf32> -> vector<8x8xf32>
    %133 = arith.addf %130, %132 : vector<8x8xf32>
    %c0_60 = arith.constant 0 : index
    %c0_61 = arith.constant 0 : index
    %134 = vector.load %arg16[%c0_60, %c0_61] : memref<8x8xf32, #tpu.memory_space<vmem>>, vector<8x8xf32>
    tpu.vector_store %arg16[%c0_60, %c0_61], %133 {strides = array<i32>} : memref<8x8xf32, #tpu.memory_space<vmem>>, vector<8x8xf32>,
    return
  }
  func.func @transform_0(%arg0: i32, %arg1: i32) -> (i32, i32) {
    %c1_i32 = arith.constant 1 : i32
    %0 = arith.muli %arg0, %c1_i32 : i32
    %1 = arith.addi %0, %arg1 : i32
    %c0_i32 = arith.constant 0 : i32
    %c0_i32_0 = arith.constant 0 : i32
    return %1, %c0_i32 : i32, i32
  }
  func.func @transform_1(%arg0: i32, %arg1: i32) -> (i32, i32) {
    %c1_i32 = arith.constant 1 : i32
    %0 = arith.muli %arg0, %c1_i32 : i32
    %1 = arith.addi %0, %arg1 : i32
    %c0_i32 = arith.constant 0 : i32
    %c0_i32_0 = arith.constant 0 : i32
    return %1, %c0_i32 : i32, i32
  }
  func.func @transform_2(%arg0: i32, %arg1: i32) -> (i32, i32) {
    %c0_i32 = arith.constant 0 : i32
    %c0_i32_0 = arith.constant 0 : i32
    %c0_i32_1 = arith.constant 0 : i32
    return %c0_i32, %c0_i32_0 : i32, i32
  }
  func.func @transform_3(%arg0: i32, %arg1: i32) -> (i32, i32) {
    %c0_i32 = arith.constant 0 : i32
    %c0_i32_0 = arith.constant 0 : i32
    %c0_i32_1 = arith.constant 0 : i32
    return %c0_i32, %c0_i32_0 : i32, i32
  }
  func.func @transform_4(%arg0: i32, %arg1: i32) -> (i32, i32) {
    %c0_i32 = arith.constant 0 : i32
    %c0_i32_0 = arith.constant 0 : i32
    %c0_i32_1 = arith.constant 0 : i32
    return %c0_i32, %c0_i32_0 : i32, i32
  }
  func.func @transform_5(%arg0: i32, %arg1: i32) -> (i32, i32) {
    %c0_i32 = arith.constant 0 : i32
    %c0_i32_0 = arith.constant 0 : i32
    %c0_i32_1 = arith.constant 0 : i32
    return %c0_i32, %c0_i32_0 : i32, i32
  }
  func.func @transform_6(%arg0: i32, %arg1: i32) -> (i32, i32) {
    %c0_i32 = arith.constant 0 : i32
    %c0_i32_0 = arith.constant 0 : i32
    %c0_i32_1 = arith.constant 0 : i32
    return %c0_i32, %c0_i32_0 : i32, i32
  }
  func.func @transform_7(%arg0: i32, %arg1: i32) -> (i32, i32) {
    %c0_i32 = arith.constant 0 : i32
    %c0_i32_0 = arith.constant 0 : i32
    %c0_i32_1 = arith.constant 0 : i32
    return %c0_i32, %c0_i32_0 : i32, i32
  }
  func.func @transform_8(%arg0: i32, %arg1: i32) -> (i32, i32) {
    %c0_i32 = arith.constant 0 : i32
    %c0_i32_0 = arith.constant 0 : i32
    %c0_i32_1 = arith.constant 0 : i32
    return %c0_i32, %c0_i32_0 : i32, i32
  }
  func.func @transform_9(%arg0: i32, %arg1: i32) -> (i32, i32) {
    %c0_i32 = arith.constant 0 : i32
    %c0_i32_0 = arith.constant 0 : i32
    %c0_i32_1 = arith.constant 0 : i32
    return %c0_i32, %c0_i32_0 : i32, i32
  }
  func.func @transform_10(%arg0: i32, %arg1: i32) -> (i32, i32) {
    %c0_i32 = arith.constant 0 : i32
    %c0_i32_0 = arith.constant 0 : i32
    %c0_i32_1 = arith.constant 0 : i32
    return %c0_i32, %c0_i32_0 : i32, i32
  }
  func.func @transform_11(%arg0: i32, %arg1: i32) -> (i32, i32) {
    %c0_i32 = arith.constant 0 : i32
    %c0_i32_0 = arith.constant 0 : i32
    %c0_i32_1 = arith.constant 0 : i32
    return %c0_i32, %c0_i32_0 : i32, i32
  }
  func.func @transform_12(%arg0: i32, %arg1: i32) -> (i32, i32) {
    %c1_i32 = arith.constant 1 : i32
    %0 = arith.muli %arg0, %c1_i32 : i32
    %1 = arith.addi %0, %arg1 : i32
    %c0_i32 = arith.constant 0 : i32
    %c0_i32_0 = arith.constant 0 : i32
    return %1, %c0_i32 : i32, i32
  }
  func.func @transform_13(%arg0: i32, %arg1: i32) -> (i32, i32) {
    %c1_i32 = arith.constant 1 : i32
    %0 = arith.muli %arg0, %c1_i32 : i32
    %1 = arith.addi %0, %arg1 : i32
    %c0_i32 = arith.constant 0 : i32
    %c0_i32_0 = arith.constant 0 : i32
    return %1, %c0_i32 : i32, i32
  }
  func.func @transform_14(%arg0: i32, %arg1: i32) -> (i32, i32) {
    %c0_i32 = arith.constant 0 : i32
    %c0_i32_0 = arith.constant 0 : i32
    return %arg0, %c0_i32 : i32, i32
  }
}

</mosaic_0001>

<bundles_post_ra>
// kernel: tpu_custom_call.1
= control target key start
LH: loop header
LB: loop body
LE: loop exit
PB: predicated region body
PF: predicated region fallthrough
CT: control target
= control target key end

     0   :  { %s2723_s0 = inlined_call_operand.vmem [shape: f32[16,128], index: 0, kind: input, shape index: {}]   ;;  %s2724_s1 = inlined_call_operand.vmem [shape: f32[16,8], index: 1, kind: input, shape index: {}]   ;;  %s2725_s2 = inlined_call_operand.vmem [shape: bf16[128,128], index: 2, kind: input, shape index: {}]   ;;  %s2726_s3 = inlined_call_operand.vmem [shape: f32[1,128], index: 3, kind: input, shape index: {}]   ;;  %s2727_s4 = inlined_call_operand.hbm [shape: bf16[128,128], index: 4, kind: input, shape index: {}]   ;;  %s2728_s5 = inlined_call_operand.vmem [shape: f32[1,128], index: 5, kind: input, shape index: {}]   ;;  %s2729_s6 = inlined_call_operand.hbm [shape: bf16[128,256], index: 6, kind: input, shape index: {}]   ;;  %s2730_s7 = inlined_call_operand.vmem [shape: f32[1,256], index: 7, kind: input, shape index: {}]   ;;  %s2731_s8 = inlined_call_operand.hbm [shape: bf16[256,128], index: 8, kind: input, shape index: {}]   ;;  %s2732_s9 = inlined_call_operand.vmem [shape: f32[1,128], index: 9, kind: input, shape index: {}]   ;;  %s2733_s10 = inlined_call_operand.vmem [shape: bf16[128,8], index: 10, kind: input, shape index: {}]   ;;  %s2734_s11 = inlined_call_operand.vmem [shape: f32[1,8], index: 11, kind: input, shape index: {}]   ;;  %s2735_s12 = inlined_call_operand.hbm [shape: f32[16,128], index: 12, kind: output, shape index: {0}]   ;;  %s2736_s13 = inlined_call_operand.hbm [shape: f32[16,128], index: 13, kind: output, shape index: {1}]   ;;  %s2737_s14 = inlined_call_operand.vmem [shape: f32[16,8], index: 14, kind: output, shape index: {2}]  }
   0x1   :  { %2751 = sst [smem:[#allocation22_spill]] %s2728_s5 }
   0x2   :  { %2752 = sst [smem:[#allocation23_spill]] %s2729_s6 }
   0x3   :  { %2753 = sst [smem:[#allocation24_spill]] %s2735_s12 }
   0x4   :  { %2754 = sst [smem:[#allocation25_spill]] %s2736_s13 }
   0x5   :  { %2755 = sst [smem:[#allocation26_spill]] %s2737_s14 }
   0x6   :  { %20 = vsyncpa [#allocation3], 0 }
   0x7   :  { %21 = vsyncpa [#allocation6], 0 }
   0x8   :  { %22 = vsyncpa [#allocation4], 0 }
   0x9   :  { %24 = vsyncpa [#allocation4 + $0x1], 0 }
   0xa   :  { %25 = vsyncpa [#allocation10], 0 }
   0xb   :  { %27 = vsyncpa [#allocation10 + $0x1], 0  ;;  %s2327_s29 = smov 0   ;;  %s2329_s30 = smov 0  }
   0xc   :  { %s2331_s15 = smov 0   ;;  %s2333_s16 = smov 0  }
   0xd   :  { %s2335_s17 = smov 0   ;;  %s2337_s18 = smov 0  }
   0xe LB: > { %2756 = sst [smem:[#allocation15_spill]] %s2215_s29  ;;  %s1652_s19 = sadd.s32 4294967295, %s2235_s18   ;;  %s2235_s18 = sphi %s2337_s18, %s33_s18   ;;  %s2231_s17 = sphi %s2335_s17, %s2786_s17   ;;  %s2227_s16 = sphi %s2333_s16, %s2785_s16   ;;  %s2223_s15 = sphi %s2331_s15, %s2784_s15   ;;  %s2219_s30 = sphi %s2329_s30, %s2788_s30   ;;  %s2215_s29 = sphi %s2327_s29, %s2787_s29  }
   0xf   : > { %2757 = sst [smem:[#allocation16_spill]] %s2223_s15  ;;  %s1653_s20 = sadd.s32 4294967294, %s2235_s18  }
  0x10   : > { %2758 = sst [smem:[#allocation17_spill]] %s2231_s17  ;;  %s45_s21 = sadd.s32 1, %s2231_s17 }
  0x11   : > { %2759 = sst [smem:[#allocation18_spill]] %s2235_s18  ;;  %s320_s22 = sadd.s32 1, %s2223_s15 }
  0x12   : > { %p47_p0 = scmp.ge.s32.totalorder %s45_s21, 2  ;;  %p330_p1 = scmp.ne.s32.totalorder %s2223_s15, %s2219_s30 }
  0x13   : > { %p331_p2 = scmp.eq.s32.totalorder %s1652_s19, 1  ;;  %p336_p3 = scmp.ne.s32.totalorder %s2219_s30, %s2215_s29 }
  0x14   : > { %s2790_s21 = smov (%p47_p0, %s45_s21), 0  ;;  %p337_p5 = scmp.eq.s32.totalorder %s1653_s20, 1 }
  0x15   : > { %2760 = sst [smem:[#allocation19_spill]] %s2790_s21  ;;  %p2367_p4 = por %p331_p2, %p330_p1 }
  0x16   : > { %s317_s24 = ssub.s32 %s2231_s17, %s2790_s21  ;;  %p1654_p6 = scmp.ge.s32.totalorder %s2235_s18, 1 }
  0x17   : > { %s2761_s23 = scalar_select %p2367_p4, 1, 0 }
  0x18   : > { %p318_p7 = scmp.eq.s32.totalorder %s317_s24, 0  ;;  %p2374_p8 = por %p337_p5, %p336_p3 }
  0x19   : > { %p398_p9 = scmp.lt.s32.totalorder %s2235_s18, 3  ;;  %p2386_p11 = scmp.eq.s32.totalorder %s1652_s19, 0 }
  0x1a   : > { %s2762_s25 = scalar_select %p2374_p8, 1, 0 }
  0x1b   : > { %s2380_s26 = scalar_select %p318_p7, %s2223_s15, %s320_s22  }
  0x1c   : > { %2763 = sst [smem:[#allocation20_spill]] %s2762_s25  ;;  %p2382_p10 = pnand %p1654_p6, %p398_p9 }
  0x1d   : > { %2764 = sst [smem:[#allocation21_spill]] %s2380_s26  ;;  %s2237_s20 = smov [#allocation5]  }
  0x1e   : > { %s2765_s27 = scalar_select %p2382_p10, 1, 0 }
  0x1f   : > { %s2766_s28 = scalar_select %p2386_p11, 1, 0 }
  0x20   : > { %p1871_p12 = pneg %p2382_p10  ;;  %s432_s24 = sshll.u32 %s2237_s20, 4  ;;  %s433_s24 = int_to_ptr.vmem [resolvable:$true] %s432_s24 }
  0x21   : > { %s2238_s22 = smov [#allocation2]   ;;  %s2768_s6 = sld [smem:[#allocation23_spill]] }
  0x22   : > { %p2394_p13 = pnand %p2386_p11, %p1871_p12  ;;  %s416_s17 = sshll.u32 %s2238_s22, 4  ;;  %s417_s17 = int_to_ptr.vmem [resolvable:$true] %s416_s17 }
  0x24   : > { %p2406_p1 = pneg %p2394_p13 }
  0x27   : > { %s2033_s19 = scalar_lea.hbm %s2768_s6, 2048 }
  0x28   : > { %p2034_p0 = scmp.ne.s32.totalorder %s2768_s6, %s2033_s19  ;;  %p2040_p5 = scmp.lt.u32.totalorder %s2033_s19, %s2768_s6 }
  0x2a   : > { %p2036_p2 = pnand %p2406_p1, %p2034_p0 }
  0x2c   : > { %p2037_p3 = pneg %p2036_p2 }
  0x2e   : > { %p2042_p6 = pnand %p2040_p5, %p2037_p3 }
  0x30   : > { %2045 = shalt.err (!%p2042_p6)
}
  0x31   : > { %s2046_s15 = scalar_lea.vmem %s433_s24, 2048  ;;  %p2054_p8 = scmp.lt.s32.totalorder %s433_s24, %s433_s24 }
  0x32   : > { %p2047_p7 = scmp.ne.s32.totalorder %s433_s24, %s2046_s15  ;;  %p2055_p4 = scmp.lt.s32.totalorder %s2046_s15, %s2046_s15 }
  0x34   : > { %p2049_p9 = pnand %p2047_p7, %p2406_p1  ;;  %p2056_p11 = por %p2055_p4, %p2054_p8 }
  0x36   : > { %p2050_p12 = pneg %p2049_p9 }
  0x38   : > { %p2057_p10 = pnand %p2056_p11, %p2050_p12 }
  0x3a   : > { %2060 = shalt.err (!%p2057_p10)
}
  0x3b   : > { %s2239_s29 = smov 128   ;;  %s2240_s25 = smov 8  }
  0x3c   : > { %1877 = dma.hbm_to_vmem [thread:$0]  (!%p2394_p13), %s2768_s6, 2048, %s433_s24, [#allocation6], %s2239_s29, %s2239_s29, %s2240_s25  }
  0x3d   : > { %s2061_s19 = scalar_lea.hbm %s2727_s4, 1024 }
  0x3e   : > { %p2062_p4 = scmp.ne.s32.totalorder %s2727_s4, %s2061_s19  ;;  %p2068_p11 = scmp.lt.u32.totalorder %s2061_s19, %s2727_s4 }
  0x40   : > { %p2064_p8 = pnand %p2062_p4, %p2406_p1 }
  0x42   : > { %p2065_p10 = pneg %p2064_p8 }
  0x44   : > { %p2070_p0 = pnand %p2068_p11, %p2065_p10 }
  0x46   : > { %2073 = shalt.err (!%p2070_p0)
}
  0x47   : > { %s2074_s12 = scalar_lea.vmem %s417_s17, 1024  ;;  %p2082_p6 = scmp.lt.s32.totalorder %s417_s17, %s417_s17 }
  0x48   : > { %p2075_p2 = scmp.ne.s32.totalorder %s417_s17, %s2074_s12  ;;  %p2083_p7 = scmp.lt.s32.totalorder %s2074_s12, %s2074_s12 }
  0x4a   : > { %p2077_p3 = pnand %p2075_p2, %p2406_p1  ;;  %p2084_p9 = por %p2083_p7, %p2082_p6 }
  0x4c   : > { %p2078_p5 = pneg %p2077_p3 }
  0x4e   : > { %p2085_p12 = pnand %p2084_p9, %p2078_p5 }
  0x50   : > { %2088 = shalt.err (!%p2085_p12)
}
  0x51   : > { %s2241_s5 = smov 64   ;;  %s2242_s13 = smov 4  }
  0x52   : > { %1874 = dma.hbm_to_vmem [thread:$0]  (!%p2394_p13), %s2727_s4, 1024, %s417_s17, [#allocation3], %s2241_s5, %s2241_s5, %s2242_s13  }
  0x53   : > { %s2243_s29 = smov [#allocation7]   ;;  %s2089_s22 = scalar_lea.hbm %s2731_s8, 2048 }
  0x54   : > { %s448_s25 = sshll.u32 %s2243_s29, 4  ;;  %p2090_p4 = scmp.ne.s32.totalorder %s2731_s8, %s2089_s22  ;;  %s449_s25 = int_to_ptr.vmem [resolvable:$true] %s448_s25 }
  0x55   : > { %p2096_p11 = scmp.lt.u32.totalorder %s2089_s22, %s2731_s8 }
  0x56   : > { %p2092_p8 = pnand %p2090_p4, %p2406_p1 }
  0x58   : > { %p2093_p10 = pneg %p2092_p8 }
  0x5a   : > { %p2098_p0 = pnand %p2096_p11, %p2093_p10 }
  0x5c   : > { %2101 = shalt.err (!%p2098_p0)
}
  0x5d   : > { %s2102_s17 = scalar_lea.vmem %s449_s25, 2048  ;;  %p2110_p6 = scmp.lt.s32.totalorder %s449_s25, %s449_s25 }
  0x5e   : > { %p2103_p2 = scmp.ne.s32.totalorder %s449_s25, %s2102_s17  ;;  %p2111_p7 = scmp.lt.s32.totalorder %s2102_s17, %s2102_s17 }
  0x60   : > { %p2105_p3 = pnand %p2103_p2, %p2406_p1  ;;  %p2112_p9 = por %p2111_p7, %p2110_p6 }
  0x62   : > { %p2106_p5 = pneg %p2105_p3 }
  0x64   : > { %p2113_p12 = pnand %p2112_p9, %p2106_p5 }
  0x66   : > { %2116 = shalt.err (!%p2113_p12)
}
  0x67   : > { %1880 = dma.hbm_to_vmem [thread:$0]  (!%p2394_p13), %s2731_s8, 2048, %s449_s25, [#allocation6], %s2241_s5, %s2241_s5, %s2242_s13  }
  0x68   : > { %p2770_p4 = scmp.ne.s32.totalorder %s2765_s27, 0 }
  0x69   : > { %p2771_p8 = scmp.ne.s32.totalorder (!%p2770_p4), %s2766_s28, 0 }
  0x6a   : > { %491 = sbr.rel (%p2770_p4) target bundleno = 2105 (0x839), region = 68 }
  0x71   : > { %2198 = dma.done.wait (%p2771_p8), [#allocation3], 1024  }
  0x72   : > { %2200 = vsyncadd (%p2771_p8), [#allocation3], 4294966272 }
  0x73   : > { %2202 = dma.done.wait (%p2771_p8), [#allocation6], 4096  }
  0x74   : > { %2204 = vsyncadd (%p2771_p8), [#allocation6], 4294963200  ;;  %v2244_v0 = vmov 0.0   ;;  %vm2245_vm0 = vmmov 0   ;;  %v1957_v1 = vld [vmem:[%s2725_s2] sm:$0xff]   ;;  %v1958_v2 = vld [vmem:[%s2725_s2 + $0x8] sm:$0xff]   ;;  %v717_v58 = vlaneseq }
  0x75   : > { %1790 = vmatprep.subr.bf16.mxu0 %v2244_v0  ;;  %1806 = vmatprep.mubr.msk.bf16.mxu0 %vm2245_vm0, %v2244_v0  ;;  %v1959_v3 = vld [vmem:[%s2725_s2 + $0x10] sm:$0xff]   ;;  %v1965_v4 = vld [vmem:[#allocation5 + $0x4] ss:$8 sps:$4 sm:$0xff]   ;;  %v1967_v5 = vld [vmem:[#allocation5] ss:$8 sps:$4 sm:$0xff]   ;;  %p560_p13 = scmp.lt.s32.totalorder %s2227_s16, 1 }
  0x76   : > { %1791 = vmatpush3.bf16.msra.mxu0 %v1957_v1  ;;  %v1960_v6 = vld [vmem:[%s2725_s2 + $0x18] sm:$0xff]   ;;  %807 = vmatprep.subr.bf16.mxu1 %v1965_v4  ;;  %v1971_v9 = vld [vmem:[#allocation5 + $0x24] ss:$8 sps:$4 sm:$0xff]   ;;  %v1973_v11 = vld [vmem:[#allocation5 + $0x20] ss:$8 sps:$4 sm:$0xff]   ;;  %v2246_v27 = vmov 0  }
  0x77   : > { %1792 = vmatprep.subr.bf16.mxu0 %v2244_v0  ;;  %v1968_v7 = vld [vmem:[#allocation5 + $0x14] ss:$8 sps:$4 sm:$0xff]   ;;  %808 = vmatpush1.bf16.msra.mxu1 %v1967_v5  ;;  %v1970_v8 = vld [vmem:[#allocation5 + $0x10] ss:$8 sps:$4 sm:$0xff]   ;;  %v1961_v10 = vld [vmem:[%s2725_s2 + $0x20] sm:$0xff]   ;;  %s561_s26 = scalar_select %p560_p13, %s2227_s16, 1 }
  0x78   : > { %809 = vmatprep.subr.bf16.mxu1 %v1968_v7  ;;  %v1962_v12 = vld [vmem:[%s2725_s2 + $0x28] sm:$0xff]   ;;  %v1974_v13 = vld [vmem:[#allocation5 + $0x34] ss:$8 sps:$4 sm:$0xff]   ;;  %v1976_v14 = vld [vmem:[#allocation5 + $0x30] ss:$8 sps:$4 sm:$0xff]   ;;  %839 = vmatprep.mubr.bf16.mxu1 %v2246_v27  ;;  %v2545_v59 = vshrl.u32 %v717_v58, 7 }
  0x79   : > { %s2495_s15 = sshll.u32 %s561_s26, 3  ;;  %v1977_v15 = vld [vmem:[#allocation5 + $0x44] ss:$8 sps:$4 sm:$0xff]   ;;  %v1963_v16 = vld [vmem:[%s2725_s2 + $0x30] sm:$0xff]   ;;  %v1979_v17 = vld [vmem:[#allocation5 + $0x40] ss:$8 sps:$4 sm:$0xff]   ;;  %1956 = vset.pattern.permute.xlu0 %v2246_v27 }
  0x7a   : > { %1793 = vmatpush3.bf16.msra.mxu0 %v1958_v2  ;;  %s563_s6 = scalar_lea.vmem %s2723_s0, %s2495_s15  ;;  %v1980_v18 = vld [vmem:[#allocation5 + $0x54] ss:$8 sps:$4 sm:$0xff]   ;;  %v1982_v21 = vld [vmem:[#allocation5 + $0x50] ss:$8 sps:$4 sm:$0xff]   ;;  %v1983_v22 = vld [vmem:[#allocation5 + $0x64] ss:$8 sps:$4 sm:$0xff]   ;;  %s569_s12 = scalar_lea.vmem %s2724_s1, %s2495_s15 }
  0x7b   : > { %1794 = vmatprep.subr.bf16.mxu0 %v2244_v0  ;;  %810 = vmatpush1.bf16.msra.mxu1 %v1970_v8  ;;  %v1964_v19 = vld [vmem:[%s2725_s2 + $0x38] sm:$0xff]   ;;  %v584_v20 = vld [vmem:[%s563_s6] sm:$0xff]  ;;  %v1991_v30 = vld [vmem:[#allocation7 + $0x48] sm:$0xff]   ;;  %v719_v60 = vsub.s32 0, %v2545_v59  ;;  %v723_v62 = vsub.s32 1, %v2545_v59  ;;  %vm1146_vm1 = vcmask 31752  }
  0x7c   : > { %811 = vmatprep.subr.bf16.mxu1 %v1971_v9  ;;  %v585_v23 = vpack.c.bf16 %v584_v20, %v584_v20  ;;  %v1985_v24 = vld [vmem:[#allocation5 + $0x60] ss:$8 sps:$4 sm:$0xff]   ;;  %v1986_v25 = vld [vmem:[#allocation5 + $0x74] ss:$8 sps:$4 sm:$0xff]   ;;  %v1988_v26 = vld [vmem:[#allocation5 + $0x70] ss:$8 sps:$4 sm:$0xff]  }
  0x7d   : > { %v1989_v28 = vld [vmem:[#allocation7 + $0x40] sm:$0xff]   ;;  %v1992_v31 = vld [vmem:[#allocation7 + $0x8] sm:$0xff]   ;;  %v1993_v32 = vld [vmem:[#allocation7 + $0x50] sm:$0xff]   ;;  %s2247_s26 = smov 127   ;;  %vm1157_vm2 = vcmask 23552   ;;  %s2248_s17 = smov 124  }
  0x7e   : > { %1795 = vmatpush3.bf16.msra.mxu0 %v1959_v3  ;;  %v1990_v29 = vld [vmem:[#allocation7] sm:$0xff]   ;;  %v1994_v33 = vld [vmem:[#allocation7 + $0x10] sm:$0xff]   ;;  %v1995_v34 = vld [vmem:[#allocation7 + $0x58] sm:$0xff]   ;;  %vm1357_vm3 = vcmask 15360   ;;  %s2609_s14 = sand.u32 1, %s2219_s30   ;;  %s1730_s21 = sshll.u32 %s2227_s16, 3 }
  0x7f   : > { %1796 = vmatprep.subr.bf16.mxu0 %v2244_v0  ;;  %812 = vmatpush1.bf16.msra.mxu1 %v1973_v11  ;;  %v1996_v35 = vld [vmem:[#allocation7 + $0x18] sm:$0xff]   ;;  %v1997_v36 = vld [vmem:[#allocation7 + $0x60] sm:$0xff]   ;;  %v1999_v38 = vld [vmem:[#allocation7 + $0x68] sm:$0xff]   ;;  %s1663_s24 = sshll.u32 %s2609_s14, 3  ;;  %vm1361_vm4 = vcmask 7168   ;;  %vm582_vm6 = vcmask 64512  }
  0x80   : > { %813 = vmatprep.subr.bf16.mxu1 %v1974_v13  ;;  %v1998_v37 = vld [vmem:[#allocation7 + $0x20] sm:$0xff]   ;;  %v2000_v39 = vld [vmem:[#allocation7 + $0x28] sm:$0xff]   ;;  %v2001_v48 = vld [vmem:[#allocation7 + $0x70] sm:$0xff]   ;;  %s2615_s6 = scalar_lea.vmem [#allocation9], %s1663_s24  ;;  %s2772_s28 = sld [smem:[#allocation26_spill]] }
  0x81   : > { %v1668_v40 = vld [vmem:[%s2726_s3] ss:$0 sm:$0xff]  ;;  %v2002_v49 = vld [vmem:[#allocation7 + $0x30] sm:$0xff]   ;;  %v2003_v50 = vld [vmem:[#allocation7 + $0x78] sm:$0xff]   ;;  %s1735_s13 = sshll.u32 %s2227_s16, 7  ;;  %s2773_s18 = sld [smem:[#allocation25_spill]] }
  0x82   : > { %1797 = vmatpush3.bf16.msra.mxu0 %v1960_v6  ;;  %v2004_v51 = vld [vmem:[#allocation7 + $0x38] sm:$0xff]   ;;  %v2005_v52 = vld [vmem:[%s2733_s10] sm:$0xff]   ;;  %v2006_v53 = vld [vmem:[%s2733_s10 + $0x8] sm:$0xff]   ;;  %s1481_s19 = sshll.u32 %s2615_s6, 4  ;;  %p2775_p10 = scmp.ne.s32.totalorder %s2761_s23, 0  ;;  %s1482_s19 = int_to_ptr.vmem [resolvable:$true] %s1481_s19 }
  0x83   : > { %1798 = vmatprep.subr.bf16.mxu0 %v2244_v0  ;;  %814 = vmatpush1.bf16.msra.mxu1 %v1976_v14  ;;  %v2007_v54 = vld [vmem:[%s2733_s10 + $0x10] sm:$0xff]   ;;  %v2008_v55 = vld [vmem:[%s2733_s10 + $0x18] sm:$0xff]   ;;  %v2009_v56 = vld [vmem:[%s2733_s10 + $0x20] sm:$0xff]  }
  0x84   : > { %815 = vmatprep.subr.bf16.mxu1 %v1977_v15  ;;  %v2010_v57 = vld [vmem:[%s2733_s10 + $0x28] sm:$0xff]   ;;  %v715_v61 = vld [vmem:[%s2730_s7] sm:$0x3]  ;;  %v2012_v13 = vld [vmem:[%s2733_s10 + $0x38] sm:$0xff]  }
  0x85   : > { %v720_v63 = vrot.slane %v715_v61, %v719_v60  ;;  %v724_v1 = vrot.slane %v715_v61, %v723_v62  ;;  %v1693_v15 = vld [vmem:[%s2732_s9] ss:$0 sm:$0xff] }
  0x86   : > { %1799 = vmatpush3.bf16.msra.mxu0 %v1961_v10  ;;  %s2630_s5 = scalar_lea.vmem %s2772_s28, %s2495_s15  ;;  %s2250_s15 = smov [#allocation9]  }
  0x87   : > { %1800 = vmatprep.subr.bf16.mxu0 %v2244_v0  ;;  %816 = vmatpush1.bf16.msra.mxu1 %v1979_v17  ;;  %583 = vst.msk [vmem:[%s2630_s5] sm:$0xff] %vm582_vm6, %v2244_v0  ;;  %s2641_s22 = scalar_lea.hbm %s2773_s18, %s1735_s13 }
  0x88   : > { %817 = vmatprep.subr.bf16.mxu1 %v1980_v18 }
  0x8a   : > { %1801 = vmatpush3.bf16.msra.mxu0 %v1962_v12  ;;  %v2011_v12 = vld [vmem:[%s2733_s10 + $0x30] sm:$0xff]  }
  0x8b   : > { %1802 = vmatprep.subr.bf16.mxu0 %v2244_v0  ;;  %818 = vmatpush1.bf16.msra.mxu1 %v1982_v21 }
  0x8c   : > { %819 = vmatprep.subr.bf16.mxu1 %v1983_v22 }
  0x8e   : > { %1803 = vmatpush3.bf16.msra.mxu0 %v1963_v16 }
  0x8f   : > { %1804 = vmatprep.subr.bf16.mxu0 %v2244_v0  ;;  %820 = vmatpush1.bf16.msra.mxu1 %v1985_v24 }
  0x90   : > { %821 = vmatprep.subr.bf16.mxu1 %v1986_v25 }
  0x92   : > { %1805 = vmatpush3.bf16.msra.mxu0 %v1964_v19 }
  0x93   : > { %822 = vmatpush1.bf16.msra.mxu1 %v1988_v26  ;;  %1748 = vmatprep.subr.bf16.mxu0 %v1989_v28 }
  0x94   : > { %1810 = vmatprep.subr.bf16.mxu1 %v2244_v0 }
  0x95   : > { %1807 = vmatmul.mubr.bf16.vlgmr.msra.gmra.mrb[0].mxu0 %v585_v23  ;;  %v1710_v23 = vld [vmem:[%s2734_s11] ss:$0 sm:$0xff] }
  0x96   : > { %1749 = vmatpush3.bf16.msra.mxu0 %v1990_v29 }
  0x97   : > { %1750 = vmatprep.subr.bf16.mxu0 %v1991_v30 }
  0x9a   : > { %1751 = vmatpush3.bf16.msra.mxu0 %v1992_v31 }
  0x9b   : > { %1752 = vmatprep.subr.bf16.mxu0 %v1993_v32 }
  0x9e   : > { %1753 = vmatpush3.bf16.msra.mxu0 %v1994_v33 }
  0x9f   : > { %1754 = vmatprep.subr.bf16.mxu0 %v1995_v34 }
  0xa2   : > { %1755 = vmatpush3.bf16.msra.mxu0 %v1996_v35 }
  0xa3   : > { %1756 = vmatprep.subr.bf16.mxu0 %v1997_v36 }
  0xa6   : > { %1757 = vmatpush3.bf16.msra.mxu0 %v1998_v37 }
  0xa7   : > { %1758 = vmatprep.subr.bf16.mxu0 %v1999_v38 }
  0xaa   : > { %1759 = vmatpush3.bf16.msra.mxu0 %v2000_v39 }
  0xab   : > { %1760 = vmatprep.subr.bf16.mxu0 %v2001_v48 }
  0xae   : > { %1761 = vmatpush3.bf16.msra.mxu0 %v2002_v49 }
  0xaf   : > { %1762 = vmatprep.subr.bf16.mxu0 %v2003_v50 }
  0xb2   : > { %1763 = vmatpush3.bf16.msra.mxu0 %v2004_v51 }
  0xb3   : > { %1830 = vmatprep.subr.bf16.mxu0 %v2244_v0 }
 0x168   : > { %v691_v41 = vpop.f32.mrb[0].mxu0 }
 0x169   : > { %v692_v42 = vadd.f32 %v1668_v40, %v691_v41  ;;  %v1808_v43 = vpop.f32.mrb[1].mxu0  ;;  %v2584_v40 = vld [vmem:[%s569_s12] sm:$0xff]  ;;  %s1449_s12 = scalar_lea.sflag [#allocation10], %s2609_s14 }
 0x16a   : > { %v694_v44 = vpop.f32.mrb[2].mxu0 }
 0x16b   : > { %v2514_v45 = vmax.f32 %v692_v42, 0.0  ;;  %v1809_v46 = vpop.f32.mrb[3].mxu0 }
 0x16d   : > { %v698_v47 = vpack.c.bf16 %v2514_v45, %v2514_v45 }
 0x16f   : > { %840 = vmatmul.mubr.bf16.vlgmr.msra.gmra.mrb[0].mxu1 %v698_v47 }
 0x170   : > { %1826 = vmatprep.mubr.msk.bf16.mxu1 %vm2245_vm0, %v2244_v0  ;;  %1811 = vmatpush3.bf16.msra.mxu1 %v2005_v52 }
 0x171   : > { %1812 = vmatprep.subr.bf16.mxu1 %v2244_v0 }
 0x174   : > { %1813 = vmatpush3.bf16.msra.mxu1 %v2006_v53 }
 0x175   : > { %1814 = vmatprep.subr.bf16.mxu1 %v2244_v0 }
 0x178   : > { %1815 = vmatpush3.bf16.msra.mxu1 %v2007_v54 }
 0x179   : > { %1816 = vmatprep.subr.bf16.mxu1 %v2244_v0 }
 0x17c   : > { %1817 = vmatpush3.bf16.msra.mxu1 %v2008_v55 }
 0x17d   : > { %1818 = vmatprep.subr.bf16.mxu1 %v2244_v0 }
 0x180   : > { %1819 = vmatpush3.bf16.msra.mxu1 %v2009_v56 }
 0x181   : > { %1820 = vmatprep.subr.bf16.mxu1 %v2244_v0 }
 0x184   : > { %1821 = vmatpush3.bf16.msra.mxu1 %v2010_v57 }
 0x185   : > { %1822 = vmatprep.subr.bf16.mxu1 %v2244_v0 }
 0x188   : > { %1823 = vmatpush3.bf16.msra.mxu1 %v2011_v12 }
 0x189   : > { %1824 = vmatprep.subr.bf16.mxu1 %v2244_v0 }
 0x18c   : > { %1825 = vmatpush3.bf16.msra.mxu1 %v2012_v13 }
 0x18d   : > { %1850 = vmatprep.subr.mxu1 %v2244_v0 }
 0x242   : > { %v841_v2 = vpop.f32.mrb[0].mxu1 }
 0x243   : > { %v842_v3 = vadd.f32 %v841_v2, %v720_v63  ;;  %v843_v4 = vpop.f32.mrb[1].mxu1  ;;  %v2014_v2 = vld [vmem:[#allocation2 + $0x8] sm:$0xff]  }
 0x244   : > { %v844_v5 = vadd.f32 %v843_v4, %v724_v1  ;;  %v845_v6 = vpop.f32.mrb[2].mxu1  ;;  %v2013_v1 = vld [vmem:[#allocation2] sm:$0xff]   ;;  %v2016_v4 = vld [vmem:[#allocation2 + $0x18] sm:$0xff]  }
 0x245   : > { %v848_v7 = vmax.f32 %v842_v3, 0.0  ;;  %v846_v8 = vpop.f32.mrb[3].mxu1  ;;  %v2015_v3 = vld [vmem:[#allocation2 + $0x10] sm:$0xff]  }
 0x246   : > { %v849_v9 = vmax.f32 %v844_v5, 0.0  ;;  %v2017_v5 = vld [vmem:[#allocation2 + $0x20] sm:$0xff]  }
 0x247   : > { %v850_v11 = vpack.c.bf16 %v848_v7, %v848_v7  ;;  %v2018_v7 = vld [vmem:[#allocation2 + $0x28] sm:$0xff]  }
 0x248   : > { %v851_v10 = vpack.c.bf16 %v849_v9, %v849_v9  ;;  %v2019_v9 = vld [vmem:[#allocation2 + $0x30] sm:$0xff]  }
 0x24a   : > { %1019 = vmatprep.mubr.bf16.mxu0 %v851_v10 }
 0x24b   : > { %1020 = vmatmul.mubr.bf16.vlgmr.msra.gmra.mrb[4].mxu0 %v850_v11 }
 0x24c   : > { %1846 = vmatprep.mubr.msk.bf16.mxu0 %vm2245_vm0, %v2244_v0  ;;  %1831 = vmatpush3.bf16.msra.mxu0 %v2013_v1 }
 0x24d   : > { %1832 = vmatprep.subr.bf16.mxu0 %v2244_v0 }
 0x250   : > { %1833 = vmatpush3.bf16.msra.mxu0 %v2014_v2 }
 0x251   : > { %1834 = vmatprep.subr.bf16.mxu0 %v2244_v0 }
 0x254   : > { %1835 = vmatpush3.bf16.msra.mxu0 %v2015_v3 }
 0x255   : > { %1836 = vmatprep.subr.bf16.mxu0 %v2244_v0 }
 0x258   : > { %1837 = vmatpush3.bf16.msra.mxu0 %v2016_v4 }
 0x259   : > { %1838 = vmatprep.subr.bf16.mxu0 %v2244_v0 }
 0x25c   : > { %1839 = vmatpush3.bf16.msra.mxu0 %v2017_v5 }
 0x25d   : > { %1840 = vmatprep.subr.bf16.mxu0 %v2244_v0 }
 0x260   : > { %1841 = vmatpush3.bf16.msra.mxu0 %v2018_v7 }
 0x261   : > { %1842 = vmatprep.subr.bf16.mxu0 %v2244_v0 }
 0x264   : > { %1843 = vmatpush3.bf16.msra.mxu0 %v2019_v9 }
 0x265   : > { %1844 = vmatprep.subr.bf16.mxu0 %v2244_v0 }
 0x31e   : > { %v1764_v14 = vpop.f32.mrb[4].mxu0 }
 0x31f   : > { %v1765_v16 = vpop.f32.mrb[5].mxu0 }
 0x320   : > { %v1766_v17 = vadd.f32 %v1765_v16, %v1764_v14  ;;  %v1767_v18 = vpop.f32.mrb[6].mxu0 }
 0x321   : > { %v1768_v19 = vpop.f32.mrb[7].mxu0 }
 0x322   : > { %v1022_v20 = vadd.f32 %v1766_v17, %v1693_v15 }
 0x324   : > { %v1027_v21 = vmax.f32 %v1022_v20, 0.0 }
 0x326   : > { %v1028_v22 = vpack.c.bf16 %v1027_v21, %v1027_v21 }
 0x328   : > { %1827 = vmatmul.mubr.bf16.vlgmr.msra.gmra.mrb[4].mxu1 %v1028_v22 }
 0x329   : > { %1852 = vmatprep.mubr.msk.f32.mxu1 %vm2245_vm0, %v2244_v0 }
 0x3fb   : > { %v1134_v24 = vpop.f32.mrb[4].mxu1 }
 0x3fc   : > { %v2570_v25 = vadd.f32 %v1710_v23, %v1134_v24  ;;  %v1828_v26 = vpop.f32.mrb[5].mxu1  ;;  %v2020_v24 = vld [vmem:[#allocation2 + $0x38] sm:$0xff]  }
 0x3fd   : > { %v1137_v27 = vpop.f32.mrb[6].mxu1  ;;  %1845 = vmatpush3.bf16.msra.mxu0 %v2020_v24 }
 0x3fe   : > { %v1829_v28 = vpop.f32.mrb[7].mxu1  ;;  %v1147_v29 = vsel %vm1146_vm1, %v2570_v25, -inf  ;;  %v1325_v42 = vsub.f32 %v2570_v25, %v2584_v40  ;;  %v1140_v6 = vsub.f32 0.0, %v2570_v25 }
 0x3ff   : > { %1148 = vmax.xlane.f32.xlu0 %v1147_v29 }
 0x400   : > { %v1352_v43 = vmul.f32 %v1325_v42, %v1325_v42  ;;  %v1141_v8 = vmul.f32 1.442695, %v1140_v6  ;;  %v2249_v42 = vmov 1.0  }
 0x48c   : > { %v1149_v30 = vpop.xlane.xlu0 %1148 }
 0x48d   : > { %v1150_v31 = vsub.f32 %v2570_v25, %v1149_v30 }
 0x48f   : > { %v1151_v32 = vmul.f32 1.442695, %v1150_v31  ;;  %v1318_v31 = vstv %s1730_s21  ;;  %s2121_s21 = sshll.u32 %s2250_s15, 4  ;;  %s2122_s21 = int_to_ptr.vmem [resolvable:$false] %s2121_s21 }
 0x490   : > { %s2123_s27 = scalar_lea.vmem %s2122_s21, 256  ;;  %p2124_p2 = scmp.lt.s32.totalorder %s1482_s19, %s2122_s21 }
 0x491   : > { %2021 = vpow2.f32 %v1151_v32 }
 0x49b   : > { %v2022_v33 = vpop.eup %2021 }
 0x49c   : > { %1154 = vrot.lane.b32.xlu0 %v2022_v33, %s2247_s26 }
 0x50e   : > { %v1155_v34 = vpop.permute.xlu0 %1154 }
 0x50f   : > { %v1158_v35 = vsel %vm1157_vm2, %v1155_v34, 0.0 }
 0x510   : > { %1159 = vadd.xlane.f32.xlu1 %v1158_v35 }
 0x59d   : > { %v1160_v36 = vpop.xlane.xlu1 %1159 }
 0x59e   : > { %2023 = vrcp.f32 %v1160_v36 }
 0x5a8   : > { %v2024_v37 = vpop.eup %2023 }
 0x5a9   : > { %v1162_v38 = vmul.f32 %v2024_v37, %v2022_v33  ;;  %v1319_v33 = vadd.s32 %v1318_v31, %v2545_v59 }
 0x5ab   : > { %v1326_v39 = vsel %vm1146_vm1, %v1162_v38, -inf  ;;  %v1342_v41 = vmul.f32 %v2584_v40, %v1162_v38  ;;  %vm1320_vm5 = vcmp.lt.s32.totalorder %v1319_v33, 16 }
 0x5ac   : > { %1327 = vmax.xlane.f32.xlu1 %v1326_v39  ;;  %v1731_v39 = vsel %vm1320_vm5, 1.0, %v2244_v0 }
 0x5bd   : > { %1174 = vrot.lane.b32.xlu1 %v2570_v25, %s2247_s26 }
 0x5c1   : > { %1167 = vrot.lane.b32.xlu1 %v1162_v38, %s2247_s26 }
 0x5c5   : > { %1344 = vrot.lane.b32.xlu1 %v1342_v41, %s2247_s26 }
 0x5c9   : > { %1354 = vrot.lane.b32.xlu1 %v1352_v43, %s2248_s17 }
 0x639   : > { %v2591_v44 = vpop.xlane.xlu1 %1327 }
 0x63a   : > { %v1329_v46 = vsub.f32 %v1162_v38, %v2591_v44 }
 0x63c   : > { %v1330_v47 = vmul.f32 1.442695, %v1329_v46 }
 0x63d   : > { %v1175_v48 = vpop.permute.xlu1 %1174 }
 0x63e   : > { %2025 = vpow2.f32 %v1330_v47  ;;  %v1177_v49 = vadd.f32 %v1175_v48, %v2570_v25 }
 0x63f   : > { %2027 = vpow2.f32 %v1141_v8 }
 0x640   : > { %v1178_v51 = vmul.f32 0.5, %v1177_v49 }
 0x641   : > { %v1168_v50 = vpop.permute.xlu1 %1167 }
 0x642   : > { %v1170_v52 = vsub.f32 %v1162_v38, %v1168_v50  ;;  %v1720_v53 = vadd.f32 -0.5, %v1178_v51 }
 0x644   : > { %v1171_v54 = vmul.f32 0.1, %v1170_v52  ;;  %v1180_v56 = vmul.f32 0.1, %v1720_v53 }
 0x645   : > { %v1345_v60 = vpop.permute.xlu1 %1344 }
 0x646   : > { %v1172_v57 = vadd.f32 1.0, %v1171_v54  ;;  %v1181_v58 = vadd.f32 1.0, %v1180_v56  ;;  %v1347_v61 = vsel %vm1157_vm2, %v1345_v60, 0.0 }
 0x648   : > { %v2026_v55 = vpop.eup %2025 }
 0x649   : > { %1333 = vrot.lane.b32.xlu0 %v2026_v55, %s2247_s26  ;;  %v1355_v62 = vpop.permute.xlu1 %1354  ;;  %v2028_v10 = vpop.eup %2027 }
 0x64a   : > { %v1358_v63 = vsel %vm1357_vm3, %v1355_v62, 0.0  ;;  %v1143_v11 = vadd.f32 1.0, %v2028_v10 }
 0x64c   : > { %2029 = vrcp.f32 %v1143_v11 }
 0x64d   : > { %1183 = vrot.lane.b32.xlu0 %v1172_v57, %s2247_s26  ;;  %s2774_s26 = smov %s2773_s18 }
 0x651   : > { %1188 = vrot.lane.b32.xlu0 %v1181_v58, %s2248_s17  ;;  %s2117_s17 = scalar_lea.vmem %s1482_s19, 128 }
 0x652   : > { %p2118_p1 = scmp.ne.s32.totalorder %s1482_s19, %s2117_s17  ;;  %p2125_p3 = scmp.lt.s32.totalorder %s2123_s27, %s2117_s17 }
 0x654   : > { %p2119_p11 = pnand %p2118_p1, %p2775_p10  ;;  %p2126_p5 = por %p2125_p3, %p2124_p2 }
 0x656   : > { %v2030_v12 = vpop.eup %2029  ;;  %p2120_p0 = pneg %p2119_p11 }
 0x657   : > { %v1719_v13 = vadd.f32 -0.5, %v2030_v12  ;;  %v1324_v34 = vsub.f32 %v2030_v12, %v2584_v40 }
 0x658   : > { %p2127_p6 = pnand %p2126_p5, %p2120_p0 }
 0x659   : > { %v1164_v16 = vmul.f32 0.1, %v1719_v13  ;;  %v1350_v36 = vmul.f32 %v1324_v34, %v1324_v34 }
 0x65b   : > { %v1165_v18 = vadd.f32 1.0, %v1164_v16 }
 0x670   : > { %1348 = vadd.xlane.f32.xlu0 %v1347_v61 }
 0x674   : > { %1359 = vadd.xlane.f32.xlu0 %v1358_v63 }
 0x6bb   : > { %v1334_v14 = vpop.permute.xlu0 %1333 }
 0x6bc   : > { %v1336_v15 = vsel %vm1157_vm2, %v1334_v14, 0.0 }
 0x6bd   : > { %1337 = vadd.xlane.f32.xlu1 %v1336_v15 }
 0x6bf   : > { %v1184_v17 = vpop.permute.xlu0 %1183 }
 0x6c0   : > { %v1186_v19 = vmul.f32 %v1184_v17, %v1165_v18 }
 0x6c3   : > { %v1189_v20 = vpop.permute.xlu0 %1188 }
 0x6c4   : > { %v1191_v21 = vmul.f32 %v1189_v20, %v1186_v19 }
 0x6c6   : > { %v1192_v22 = vmul.f32 0.1, %v1191_v21 }
 0x6c8   : > { %v1193_v23 = vadd.f32 0.9, %v1192_v22 }
 0x6ca   : > { %1196 = vperm.xlu0 %1956, %v1193_v23  }
 0x6fd   : > { %v1349_v25 = vpop.xlane.xlu0 %1348 }
 0x701   : > { %v1360_v26 = vpop.xlane.xlu0 %1359 }
 0x749   : > { %v1197_v27 = vpop.permute.xlu0 %1196 }
 0x74a   : > { %v1199_v28 = vmul.f32 %v1197_v27, %v2514_v45  ;;  %v1338_v29 = vpop.xlane.xlu1 %1337 }
 0x74b   : > { %2031 = vlog2.f32 %v1338_v29 }
 0x74c   : > { %1200 = vst [vmem:[%s2615_s6] sm:$0xff] %v1199_v28  ;;  %v1201_v30 = vpack.c.bf16 %v1199_v28, %v1199_v28 }
 0x74e   : > { %1847 = vmatmul.mubr.bf16.vlgmr.msra.gmra.mrb[8].mxu0 %v1201_v30 }
 0x755   : > { %v2032_v32 = vpop.eup %2031 }
 0x756   : > { %v1340_v35 = vmul.f32 0.6931472, %v2032_v32 }
 0x758   : > { %v1341_v45 = vadd.f32 %v1340_v35, %v2591_v44 }
 0x75a   : > { %v1351_v37 = vsub.f32 %v1341_v45, %v1349_v25 }
 0x75c   : > { %v1362_v38 = vsel %vm1361_vm4, %v1350_v36, %v1351_v37 }
 0x75d   : > { %v1363_v41 = vsel %vm1357_vm3, %v1362_v38, %v1360_v26 }
 0x75e   : > { %v1364_v59 = vsel %vm1157_vm2, %v1363_v41, 0.0 }
 0x75f   : > { %v1365_v40 = vmul.f32 %v1731_v39, %v1364_v59 }
 0x761   : > { %1851 = vmatpush3.msra.mxu1 %v1365_v40 }
 0x762   : > { %1853 = vmatmul.mubr.msk.f32.vlgmr.msra.gmra.mrb[8].mxu1 %vm582_vm6, %v2249_v42 }
 0x763   : > { %2130 = shalt.err (!%p2127_p6)
}
 0x764   : > { %s2131_s6 = scalar_lea.hbm %s2641_s22, 128  ;;  %s2135_s29 = scalar_lea.hbm %s2774_s26, 256 }
 0x765   : > { %p2132_p7 = scmp.ne.s32.totalorder %s2641_s22, %s2131_s6  ;;  %p2136_p4 = scmp.lt.u32.totalorder %s2641_s22, %s2774_s26 }
 0x766   : > { %p2137_p8 = scmp.lt.u32.totalorder %s2135_s29, %s2131_s6  ;;  %p2139_p1 = scmp.lt.u32.totalorder %s2131_s6, %s2641_s22 }
 0x767   : > { %p2133_p9 = pnand %p2132_p7, %p2775_p10 }
 0x768   : > { %p2138_p13 = por %p2137_p8, %p2136_p4 }
 0x769   : > { %p2134_p12 = pneg %p2133_p9 }
 0x76a   : > { %p2140_p11 = por %p2139_p1, %p2138_p13 }
 0x76c   : > { %p2141_p0 = pnand %p2140_p11, %p2134_p12 }
 0x76e   : > { %2144 = shalt.err (!%p2141_p0)
}
 0x76f   : > { %1868 = dma.vmem_to_hbm [thread:$0]  (%p2775_p10), %s1482_s19, 128, %s2641_s22, %s1449_s12  }
 0x770   : > { %s2776_s21 = sld [smem:[#allocation22_spill]]  ;;  %s545_s27 = scalar_lea.vmem [#allocation8], %s1663_s24 }
 0x771   : > { %s1467_s20 = sshll.u32 %s545_s27, 4  ;;  %s2777_s29 = sld [smem:[#allocation24_spill]]  ;;  %s2674_s20 = int_to_ptr.vmem [resolvable:$true] %s1467_s20 }
 0x772   : > { %s1444_s22 = scalar_lea.sflag [#allocation4], %s2609_s14  ;;  %s2145_s24 = scalar_lea.vmem %s2674_s20, 128 }
 0x773   : > { %p2146_p2 = scmp.ne.s32.totalorder %s2674_s20, %s2145_s24  ;;  %s2251_s16 = smov [#allocation8]  }
 0x774   : > { %s2149_s19 = sshll.u32 %s2251_s16, 4  ;;  %s2150_s19 = int_to_ptr.vmem [resolvable:$false] %s2149_s19 }
 0x775   : > { %p2147_p3 = pnand %p2146_p2, %p2775_p10  ;;  %s2151_s12 = scalar_lea.vmem %s2150_s19, 256 }
 0x776   : > { %v1721_v0 = vld [vmem:[%s2776_s21] ss:$0 sm:$0xff]  ;;  %p2152_p6 = scmp.lt.s32.totalorder %s2674_s20, %s2150_s19  ;;  %p2153_p7 = scmp.lt.s32.totalorder %s2151_s12, %s2145_s24 }
 0x777   : > { %s2778_s25 = smov %s2777_s29  ;;  %s2672_s18 = scalar_lea.hbm %s2777_s29, %s1735_s13 }
 0x778   : > { %p2148_p5 = pneg %p2147_p3  ;;  %p2154_p9 = por %p2153_p7, %p2152_p6 }
 0x77a   : > { %p2155_p12 = pnand %p2154_p9, %p2148_p5 }
 0x821   : > { %v1307_v43 = vpop.f32.mrb[8].mxu0 }
 0x822   : > { %v1308_v44 = vadd.f32 %v1721_v0, %v1307_v43  ;;  %v1848_v46 = vpop.f32.mrb[9].mxu0 }
 0x823   : > { %v1310_v47 = vpop.f32.mrb[10].mxu0 }
 0x824   : > { %1313 = vst [vmem:[%s545_s27] sm:$0xff] %v1308_v44  ;;  %v1849_v48 = vpop.f32.mrb[11].mxu0 }
 0x825   : > { %2158 = shalt.err (!%p2155_p12)
}
 0x826   : > { %s2159_s14 = scalar_lea.hbm %s2672_s18, 128  ;;  %s2163_s15 = scalar_lea.hbm %s2778_s25, 256 }
 0x827   : > { %p2160_p4 = scmp.ne.s32.totalorder %s2672_s18, %s2159_s14  ;;  %p2164_p1 = scmp.lt.u32.totalorder %s2672_s18, %s2778_s25 }
 0x828   : > { %p2165_p11 = scmp.lt.u32.totalorder %s2163_s15, %s2159_s14  ;;  %p2167_p2 = scmp.lt.u32.totalorder %s2159_s14, %s2672_s18 }
 0x829   : > { %p2161_p8 = pnand %p2160_p4, %p2775_p10 }
 0x82a   : > { %p2166_p0 = por %p2165_p11, %p2164_p1 }
 0x82b   : > { %p2162_p13 = pneg %p2161_p8 }
 0x82c   : > { %p2168_p3 = por %p2167_p2, %p2166_p0 }
 0x82e   : > { %p2169_p5 = pnand %p2168_p3, %p2162_p13 }
 0x830   : > { %2172 = shalt.err (!%p2169_p5)
}
 0x831   : > { %1867 = dma.vmem_to_hbm [thread:$0]  (%p2775_p10), %s2674_s20, 128, %s2672_s18, %s1444_s22   ;;  %v1366_v49 = vld [vmem:[%s2630_s5] sm:$0xff] }
 0x835   : > { %v1437_v50 = vpop.f32.mrb[8].mxu1 }
 0x836   : > { %v1441_v51 = vadd.f32 %v1437_v50, %v1366_v49  ;;  %v1854_v52 = vpop.f32.mrb[9].mxu1 }
 0x838   : > { %1442 = vst.msk [vmem:[%s2630_s5] sm:$0xff] %vm582_vm6, %v1441_v51 }
 0x839 PF: > { %s2779_s6 = sld [smem:[#allocation18_spill]]  ;;  %s2780_s28 = sld [smem:[#allocation15_spill]] }
 0x83a   : > { %s2781_s29 = sld [smem:[#allocation20_spill]] }
 0x83f   : > { %p1894_p6 = scmp.ge.s32.totalorder %s2779_s6, 2  ;;  %s1496_s24 = sand.u32 1, %s2780_s28  }
 0x840   : > { %p2782_p7 = scmp.ne.s32.totalorder %s2781_s29, 0  ;;  %s1497_s23 = scalar_lea.sflag [#allocation4], %s1496_s24 }
 0x842   : > { %p1882_p9 = pnand %p1894_p6, %p2782_p7 }
 0x844   : > { %2206 = dma.done.wait (!%p1882_p9), %s1497_s23, 128  }
 0x845   : > { %2208 = vsyncadd (!%p1882_p9), %s1497_s23, 4294967168  ;;  %s1506_s16 = scalar_lea.sflag [#allocation10], %s1496_s24 }
 0x846   : > { %2210 = dma.done.wait (!%p1882_p9), %s1506_s16, 128  }
 0x847   : > { %2212 = vsyncadd (!%p1882_p9), %s1506_s16, 4294967168  ;;  %s33_s18 = sadd.s32 1, %s2779_s6   ;;  %s2783_s20 = sld [smem:[#allocation16_spill]] }
 0x848   : > { %p30_p10 = scmp.ge.s32.totalorder %s33_s18, 4   ;;  %s2784_s15 = sld [smem:[#allocation21_spill]] }
 0x849   : > { %s2785_s16 = sld [smem:[#allocation17_spill]]  ;;  %s2786_s17 = sld [smem:[#allocation19_spill]] }
 0x84a   : > { %s2787_s29 = smov %s2219_s30  ;;  %32 = sbr.rel (!%p30_p10) target bundleno = 14 (0xe), region = 152 }
 0x84d   : > { %s2788_s30 = smov %s2783_s20 }
 0x851   :  { %1518 = vsyncpa [#allocation3], 1 }
 0x852   :  { %1520 = vsyncpa [#allocation3 + $0x1], 1 }
 0x853   :  { %1521 = vsyncpa [#allocation6], 1 }
 0x854   :  { %1522 = vsyncpa [#allocation4], 1 }
 0x855   :  { %1524 = vsyncpa [#allocation4 + $0x1], 1 }
 0x856   :  { %1525 = vsyncpa [#allocation10], 1 }
 0x857   :  { %1527 = vsyncpa [#allocation10 + $0x1], 1 }

// kernel: tpu_custom_call.1
= control target key start
LH: loop header
LB: loop body
LE: loop exit
PB: predicated region body
PF: predicated region fallthrough
CT: control target
= control target key end

     0   :  { %s2723_s0 = inlined_call_operand.vmem [shape: f32[16,128], index: 0, kind: input, shape index: {}]   ;;  %s2724_s1 = inlined_call_operand.vmem [shape: f32[16,8], index: 1, kind: input, shape index: {}]   ;;  %s2725_s2 = inlined_call_operand.vmem [shape: bf16[128,128], index: 2, kind: input, shape index: {}]   ;;  %s2726_s3 = inlined_call_operand.vmem [shape: f32[1,128], index: 3, kind: input, shape index: {}]   ;;  %s2727_s4 = inlined_call_operand.hbm [shape: bf16[128,128], index: 4, kind: input, shape index: {}]   ;;  %s2728_s5 = inlined_call_operand.vmem [shape: f32[1,128], index: 5, kind: input, shape index: {}]   ;;  %s2729_s6 = inlined_call_operand.hbm [shape: bf16[128,256], index: 6, kind: input, shape index: {}]   ;;  %s2730_s7 = inlined_call_operand.vmem [shape: f32[1,256], index: 7, kind: input, shape index: {}]   ;;  %s2731_s8 = inlined_call_operand.hbm [shape: bf16[256,128], index: 8, kind: input, shape index: {}]   ;;  %s2732_s9 = inlined_call_operand.vmem [shape: f32[1,128], index: 9, kind: input, shape index: {}]   ;;  %s2733_s10 = inlined_call_operand.vmem [shape: bf16[128,8], index: 10, kind: input, shape index: {}]   ;;  %s2734_s11 = inlined_call_operand.vmem [shape: f32[1,8], index: 11, kind: input, shape index: {}]   ;;  %s2735_s12 = inlined_call_operand.hbm [shape: f32[16,128], index: 12, kind: output, shape index: {0}]   ;;  %s2736_s13 = inlined_call_operand.hbm [shape: f32[16,128], index: 13, kind: output, shape index: {1}]   ;;  %s2737_s14 = inlined_call_operand.vmem [shape: f32[16,8], index: 14, kind: output, shape index: {2}]  }
   0x1   :  { %2751 = sst [smem:[#allocation22_spill]] %s2728_s5 }
   0x2   :  { %2752 = sst [smem:[#allocation23_spill]] %s2729_s6 }
   0x3   :  { %2753 = sst [smem:[#allocation24_spill]] %s2735_s12 }
   0x4   :  { %2754 = sst [smem:[#allocation25_spill]] %s2736_s13 }
   0x5   :  { %2755 = sst [smem:[#allocation26_spill]] %s2737_s14 }
   0x6   :  { %20 = vsyncpa [#allocation3], 0 }
   0x7   :  { %21 = vsyncpa [#allocation6], 0 }
   0x8   :  { %22 = vsyncpa [#allocation4], 0 }
   0x9   :  { %24 = vsyncpa [#allocation4 + $0x1], 0 }
   0xa   :  { %25 = vsyncpa [#allocation10], 0 }
   0xb   :  { %27 = vsyncpa [#allocation10 + $0x1], 0  ;;  %s2327_s29 = smov 0   ;;  %s2329_s30 = smov 0  }
   0xc   :  { %s2331_s15 = smov 0   ;;  %s2333_s16 = smov 0  }
   0xd   :  { %s2335_s17 = smov 0   ;;  %s2337_s18 = smov 0  }
   0xe LB: > { %2756 = sst [smem:[#allocation15_spill]] %s2215_s29  ;;  %s1652_s19 = sadd.s32 4294967295, %s2235_s18   ;;  %s2235_s18 = sphi %s2337_s18, %s33_s18   ;;  %s2231_s17 = sphi %s2335_s17, %s2786_s17   ;;  %s2227_s16 = sphi %s2333_s16, %s2785_s16   ;;  %s2223_s15 = sphi %s2331_s15, %s2784_s15   ;;  %s2219_s30 = sphi %s2329_s30, %s2788_s30   ;;  %s2215_s29 = sphi %s2327_s29, %s2787_s29  }
   0xf   : > { %2757 = sst [smem:[#allocation16_spill]] %s2223_s15  ;;  %s1653_s20 = sadd.s32 4294967294, %s2235_s18  }
  0x10   : > { %2758 = sst [smem:[#allocation17_spill]] %s2231_s17  ;;  %s45_s21 = sadd.s32 1, %s2231_s17 }
  0x11   : > { %2759 = sst [smem:[#allocation18_spill]] %s2235_s18  ;;  %s320_s22 = sadd.s32 1, %s2223_s15 }
  0x12   : > { %p47_p0 = scmp.ge.s32.totalorder %s45_s21, 2  ;;  %p330_p1 = scmp.ne.s32.totalorder %s2223_s15, %s2219_s30 }
  0x13   : > { %p331_p2 = scmp.eq.s32.totalorder %s1652_s19, 1  ;;  %p336_p3 = scmp.ne.s32.totalorder %s2219_s30, %s2215_s29 }
  0x14   : > { %s2790_s21 = smov (%p47_p0, %s45_s21), 0  ;;  %p337_p5 = scmp.eq.s32.totalorder %s1653_s20, 1 }
  0x15   : > { %2760 = sst [smem:[#allocation19_spill]] %s2790_s21  ;;  %p2367_p4 = por %p331_p2, %p330_p1 }
  0x16   : > { %s317_s24 = ssub.s32 %s2231_s17, %s2790_s21  ;;  %p1654_p6 = scmp.ge.s32.totalorder %s2235_s18, 1 }
  0x17   : > { %s2761_s23 = scalar_select %p2367_p4, 1, 0 }
  0x18   : > { %p318_p7 = scmp.eq.s32.totalorder %s317_s24, 0  ;;  %p2374_p8 = por %p337_p5, %p336_p3 }
  0x19   : > { %p398_p9 = scmp.lt.s32.totalorder %s2235_s18, 3  ;;  %p2386_p11 = scmp.eq.s32.totalorder %s1652_s19, 0 }
  0x1a   : > { %s2762_s25 = scalar_select %p2374_p8, 1, 0 }
  0x1b   : > { %s2380_s26 = scalar_select %p318_p7, %s2223_s15, %s320_s22  }
  0x1c   : > { %2763 = sst [smem:[#allocation20_spill]] %s2762_s25  ;;  %p2382_p10 = pnand %p1654_p6, %p398_p9 }
  0x1d   : > { %2764 = sst [smem:[#allocation21_spill]] %s2380_s26  ;;  %s2237_s20 = smov [#allocation5]  }
  0x1e   : > { %s2765_s27 = scalar_select %p2382_p10, 1, 0 }
  0x1f   : > { %s2766_s28 = scalar_select %p2386_p11, 1, 0 }
  0x20   : > { %p1871_p12 = pneg %p2382_p10  ;;  %s432_s24 = sshll.u32 %s2237_s20, 4  ;;  %s433_s24 = int_to_ptr.vmem [resolvable:$true] %s432_s24 }
  0x21   : > { %s2238_s22 = smov [#allocation2]   ;;  %s2768_s6 = sld [smem:[#allocation23_spill]] }
  0x22   : > { %p2394_p13 = pnand %p2386_p11, %p1871_p12  ;;  %s416_s17 = sshll.u32 %s2238_s22, 4  ;;  %s417_s17 = int_to_ptr.vmem [resolvable:$true] %s416_s17 }
  0x24   : > { %p2406_p1 = pneg %p2394_p13 }
  0x27   : > { %s2033_s19 = scalar_lea.hbm %s2768_s6, 2048 }
  0x28   : > { %p2034_p0 = scmp.ne.s32.totalorder %s2768_s6, %s2033_s19  ;;  %p2040_p5 = scmp.lt.u32.totalorder %s2033_s19, %s2768_s6 }
  0x2a   : > { %p2036_p2 = pnand %p2406_p1, %p2034_p0 }
  0x2c   : > { %p2037_p3 = pneg %p2036_p2 }
  0x2e   : > { %p2042_p6 = pnand %p2040_p5, %p2037_p3 }
  0x30   : > { %2045 = shalt.err (!%p2042_p6)
}
  0x31   : > { %s2046_s15 = scalar_lea.vmem %s433_s24, 2048  ;;  %p2054_p8 = scmp.lt.s32.totalorder %s433_s24, %s433_s24 }
  0x32   : > { %p2047_p7 = scmp.ne.s32.totalorder %s433_s24, %s2046_s15  ;;  %p2055_p4 = scmp.lt.s32.totalorder %s2046_s15, %s2046_s15 }
  0x34   : > { %p2049_p9 = pnand %p2047_p7, %p2406_p1  ;;  %p2056_p11 = por %p2055_p4, %p2054_p8 }
  0x36   : > { %p2050_p12 = pneg %p2049_p9 }
  0x38   : > { %p2057_p10 = pnand %p2056_p11, %p2050_p12 }
  0x3a   : > { %2060 = shalt.err (!%p2057_p10)
}
  0x3b   : > { %s2239_s29 = smov 128   ;;  %s2240_s25 = smov 8  }
  0x3c   : > { %1877 = dma.hbm_to_vmem [thread:$0]  (!%p2394_p13), %s2768_s6, 2048, %s433_s24, [#allocation6], %s2239_s29, %s2239_s29, %s2240_s25  }
  0x3d   : > { %s2061_s19 = scalar_lea.hbm %s2727_s4, 1024 }
  0x3e   : > { %p2062_p4 = scmp.ne.s32.totalorder %s2727_s4, %s2061_s19  ;;  %p2068_p11 = scmp.lt.u32.totalorder %s2061_s19, %s2727_s4 }
  0x40   : > { %p2064_p8 = pnand %p2062_p4, %p2406_p1 }
  0x42   : > { %p2065_p10 = pneg %p2064_p8 }
  0x44   : > { %p2070_p0 = pnand %p2068_p11, %p2065_p10 }
  0x46   : > { %2073 = shalt.err (!%p2070_p0)
}
  0x47   : > { %s2074_s12 = scalar_lea.vmem %s417_s17, 1024  ;;  %p2082_p6 = scmp.lt.s32.totalorder %s417_s17, %s417_s17 }
  0x48   : > { %p2075_p2 = scmp.ne.s32.totalorder %s417_s17, %s2074_s12  ;;  %p2083_p7 = scmp.lt.s32.totalorder %s2074_s12, %s2074_s12 }
  0x4a   : > { %p2077_p3 = pnand %p2075_p2, %p2406_p1  ;;  %p2084_p9 = por %p2083_p7, %p2082_p6 }
  0x4c   : > { %p2078_p5 = pneg %p2077_p3 }
  0x4e   : > { %p2085_p12 = pnand %p2084_p9, %p2078_p5 }
  0x50   : > { %2088 = shalt.err (!%p2085_p12)
}
  0x51   : > { %s2241_s5 = smov 64   ;;  %s2242_s13 = smov 4  }
  0x52   : > { %1874 = dma.hbm_to_vmem [thread:$0]  (!%p2394_p13), %s2727_s4, 1024, %s417_s17, [#allocation3], %s2241_s5, %s2241_s5, %s2242_s13  }
  0x53   : > { %s2243_s29 = smov [#allocation7]   ;;  %s2089_s22 = scalar_lea.hbm %s2731_s8, 2048 }
  0x54   : > { %s448_s25 = sshll.u32 %s2243_s29, 4  ;;  %p2090_p4 = scmp.ne.s32.totalorder %s2731_s8, %s2089_s22  ;;  %s449_s25 = int_to_ptr.vmem [resolvable:$true] %s448_s25 }
  0x55   : > { %p2096_p11 = scmp.lt.u32.totalorder %s2089_s22, %s2731_s8 }
  0x56   : > { %p2092_p8 = pnand %p2090_p4, %p2406_p1 }
  0x58   : > { %p2093_p10 = pneg %p2092_p8 }
  0x5a   : > { %p2098_p0 = pnand %p2096_p11, %p2093_p10 }
  0x5c   : > { %2101 = shalt.err (!%p2098_p0)
}
  0x5d   : > { %s2102_s17 = scalar_lea.vmem %s449_s25, 2048  ;;  %p2110_p6 = scmp.lt.s32.totalorder %s449_s25, %s449_s25 }
  0x5e   : > { %p2103_p2 = scmp.ne.s32.totalorder %s449_s25, %s2102_s17  ;;  %p2111_p7 = scmp.lt.s32.totalorder %s2102_s17, %s2102_s17 }
  0x60   : > { %p2105_p3 = pnand %p2103_p2, %p2406_p1  ;;  %p2112_p9 = por %p2111_p7, %p2110_p6 }
  0x62   : > { %p2106_p5 = pneg %p2105_p3 }
  0x64   : > { %p2113_p12 = pnand %p2112_p9, %p2106_p5 }
  0x66   : > { %2116 = shalt.err (!%p2113_p12)
}
  0x67   : > { %1880 = dma.hbm_to_vmem [thread:$0]  (!%p2394_p13), %s2731_s8, 2048, %s449_s25, [#allocation6], %s2241_s5, %s2241_s5, %s2242_s13  }
  0x68   : > { %p2770_p4 = scmp.ne.s32.totalorder %s2765_s27, 0 }
  0x69   : > { %p2771_p8 = scmp.ne.s32.totalorder (!%p2770_p4), %s2766_s28, 0 }
  0x6a   : > { %491 = sbr.rel (%p2770_p4) target bundleno = 2105 (0x839), region = 68 }
  0x71   : > { %2198 = dma.done.wait (%p2771_p8), [#allocation3], 1024  }
  0x72   : > { %2200 = vsyncadd (%p2771_p8), [#allocation3], 4294966272 }
  0x73   : > { %2202 = dma.done.wait (%p2771_p8), [#allocation6], 4096  }
  0x74   : > { %2204 = vsyncadd (%p2771_p8), [#allocation6], 4294963200  ;;  %v2244_v0 = vmov 0.0   ;;  %vm2245_vm0 = vmmov 0   ;;  %v1957_v1 = vld [vmem:[%s2725_s2] sm:$0xff]   ;;  %v1958_v2 = vld [vmem:[%s2725_s2 + $0x8] sm:$0xff]   ;;  %v717_v58 = vlaneseq }
  0x75   : > { %1790 = vmatprep.subr.bf16.mxu0 %v2244_v0  ;;  %1806 = vmatprep.mubr.msk.bf16.mxu0 %vm2245_vm0, %v2244_v0  ;;  %v1959_v3 = vld [vmem:[%s2725_s2 + $0x10] sm:$0xff]   ;;  %v1965_v4 = vld [vmem:[#allocation5 + $0x4] ss:$8 sps:$4 sm:$0xff]   ;;  %v1967_v5 = vld [vmem:[#allocation5] ss:$8 sps:$4 sm:$0xff]   ;;  %p560_p13 = scmp.lt.s32.totalorder %s2227_s16, 1 }
  0x76   : > { %1791 = vmatpush3.bf16.msra.mxu0 %v1957_v1  ;;  %v1960_v6 = vld [vmem:[%s2725_s2 + $0x18] sm:$0xff]   ;;  %807 = vmatprep.subr.bf16.mxu1 %v1965_v4  ;;  %v1971_v9 = vld [vmem:[#allocation5 + $0x24] ss:$8 sps:$4 sm:$0xff]   ;;  %v1973_v11 = vld [vmem:[#allocation5 + $0x20] ss:$8 sps:$4 sm:$0xff]   ;;  %v2246_v27 = vmov 0  }
  0x77   : > { %1792 = vmatprep.subr.bf16.mxu0 %v2244_v0  ;;  %v1968_v7 = vld [vmem:[#allocation5 + $0x14] ss:$8 sps:$4 sm:$0xff]   ;;  %808 = vmatpush1.bf16.msra.mxu1 %v1967_v5  ;;  %v1970_v8 = vld [vmem:[#allocation5 + $0x10] ss:$8 sps:$4 sm:$0xff]   ;;  %v1961_v10 = vld [vmem:[%s2725_s2 + $0x20] sm:$0xff]   ;;  %s561_s26 = scalar_select %p560_p13, %s2227_s16, 1 }
  0x78   : > { %809 = vmatprep.subr.bf16.mxu1 %v1968_v7  ;;  %v1962_v12 = vld [vmem:[%s2725_s2 + $0x28] sm:$0xff]   ;;  %v1974_v13 = vld [vmem:[#allocation5 + $0x34] ss:$8 sps:$4 sm:$0xff]   ;;  %v1976_v14 = vld [vmem:[#allocation5 + $0x30] ss:$8 sps:$4 sm:$0xff]   ;;  %839 = vmatprep.mubr.bf16.mxu1 %v2246_v27  ;;  %v2545_v59 = vshrl.u32 %v717_v58, 7 }
  0x79   : > { %s2495_s15 = sshll.u32 %s561_s26, 3  ;;  %v1977_v15 = vld [vmem:[#allocation5 + $0x44] ss:$8 sps:$4 sm:$0xff]   ;;  %v1963_v16 = vld [vmem:[%s2725_s2 + $0x30] sm:$0xff]   ;;  %v1979_v17 = vld [vmem:[#allocation5 + $0x40] ss:$8 sps:$4 sm:$0xff]   ;;  %1956 = vset.pattern.permute.xlu0 %v2246_v27 }
  0x7a   : > { %1793 = vmatpush3.bf16.msra.mxu0 %v1958_v2  ;;  %s563_s6 = scalar_lea.vmem %s2723_s0, %s2495_s15  ;;  %v1980_v18 = vld [vmem:[#allocation5 + $0x54] ss:$8 sps:$4 sm:$0xff]   ;;  %v1982_v21 = vld [vmem:[#allocation5 + $0x50] ss:$8 sps:$4 sm:$0xff]   ;;  %v1983_v22 = vld [vmem:[#allocation5 + $0x64] ss:$8 sps:$4 sm:$0xff]   ;;  %s569_s12 = scalar_lea.vmem %s2724_s1, %s2495_s15 }
  0x7b   : > { %1794 = vmatprep.subr.bf16.mxu0 %v2244_v0  ;;  %810 = vmatpush1.bf16.msra.mxu1 %v1970_v8  ;;  %v1964_v19 = vld [vmem:[%s2725_s2 + $0x38] sm:$0xff]   ;;  %v584_v20 = vld [vmem:[%s563_s6] sm:$0xff]  ;;  %v1991_v30 = vld [vmem:[#allocation7 + $0x48] sm:$0xff]   ;;  %v719_v60 = vsub.s32 0, %v2545_v59  ;;  %v723_v62 = vsub.s32 1, %v2545_v59  ;;  %vm1146_vm1 = vcmask 31752  }
  0x7c   : > { %811 = vmatprep.subr.bf16.mxu1 %v1971_v9  ;;  %v585_v23 = vpack.c.bf16 %v584_v20, %v584_v20  ;;  %v1985_v24 = vld [vmem:[#allocation5 + $0x60] ss:$8 sps:$4 sm:$0xff]   ;;  %v1986_v25 = vld [vmem:[#allocation5 + $0x74] ss:$8 sps:$4 sm:$0xff]   ;;  %v1988_v26 = vld [vmem:[#allocation5 + $0x70] ss:$8 sps:$4 sm:$0xff]  }
  0x7d   : > { %v1989_v28 = vld [vmem:[#allocation7 + $0x40] sm:$0xff]   ;;  %v1992_v31 = vld [vmem:[#allocation7 + $0x8] sm:$0xff]   ;;  %v1993_v32 = vld [vmem:[#allocation7 + $0x50] sm:$0xff]   ;;  %s2247_s26 = smov 127   ;;  %vm1157_vm2 = vcmask 23552   ;;  %s2248_s17 = smov 124  }
  0x7e   : > { %1795 = vmatpush3.bf16.msra.mxu0 %v1959_v3  ;;  %v1990_v29 = vld [vmem:[#allocation7] sm:$0xff]   ;;  %v1994_v33 = vld [vmem:[#allocation7 + $0x10] sm:$0xff]   ;;  %v1995_v34 = vld [vmem:[#allocation7 + $0x58] sm:$0xff]   ;;  %vm1357_vm3 = vcmask 15360   ;;  %s2609_s14 = sand.u32 1, %s2219_s30   ;;  %s1730_s21 = sshll.u32 %s2227_s16, 3 }
  0x7f   : > { %1796 = vmatprep.subr.bf16.mxu0 %v2244_v0  ;;  %812 = vmatpush1.bf16.msra.mxu1 %v1973_v11  ;;  %v1996_v35 = vld [vmem:[#allocation7 + $0x18] sm:$0xff]   ;;  %v1997_v36 = vld [vmem:[#allocation7 + $0x60] sm:$0xff]   ;;  %v1999_v38 = vld [vmem:[#allocation7 + $0x68] sm:$0xff]   ;;  %s1663_s24 = sshll.u32 %s2609_s14, 3  ;;  %vm1361_vm4 = vcmask 7168   ;;  %vm582_vm6 = vcmask 64512  }
  0x80   : > { %813 = vmatprep.subr.bf16.mxu1 %v1974_v13  ;;  %v1998_v37 = vld [vmem:[#allocation7 + $0x20] sm:$0xff]   ;;  %v2000_v39 = vld [vmem:[#allocation7 + $0x28] sm:$0xff]   ;;  %v2001_v48 = vld [vmem:[#allocation7 + $0x70] sm:$0xff]   ;;  %s2615_s6 = scalar_lea.vmem [#allocation9], %s1663_s24  ;;  %s2772_s28 = sld [smem:[#allocation26_spill]] }
  0x81   : > { %v1668_v40 = vld [vmem:[%s2726_s3] ss:$0 sm:$0xff]  ;;  %v2002_v49 = vld [vmem:[#allocation7 + $0x30] sm:$0xff]   ;;  %v2003_v50 = vld [vmem:[#allocation7 + $0x78] sm:$0xff]   ;;  %s1735_s13 = sshll.u32 %s2227_s16, 7  ;;  %s2773_s18 = sld [smem:[#allocation25_spill]] }
  0x82   : > { %1797 = vmatpush3.bf16.msra.mxu0 %v1960_v6  ;;  %v2004_v51 = vld [vmem:[#allocation7 + $0x38] sm:$0xff]   ;;  %v2005_v52 = vld [vmem:[%s2733_s10] sm:$0xff]   ;;  %v2006_v53 = vld [vmem:[%s2733_s10 + $0x8] sm:$0xff]   ;;  %s1481_s19 = sshll.u32 %s2615_s6, 4  ;;  %p2775_p10 = scmp.ne.s32.totalorder %s2761_s23, 0  ;;  %s1482_s19 = int_to_ptr.vmem [resolvable:$true] %s1481_s19 }
  0x83   : > { %1798 = vmatprep.subr.bf16.mxu0 %v2244_v0  ;;  %814 = vmatpush1.bf16.msra.mxu1 %v1976_v14  ;;  %v2007_v54 = vld [vmem:[%s2733_s10 + $0x10] sm:$0xff]   ;;  %v2008_v55 = vld [vmem:[%s2733_s10 + $0x18] sm:$0xff]   ;;  %v2009_v56 = vld [vmem:[%s2733_s10 + $0x20] sm:$0xff]  }
  0x84   : > { %815 = vmatprep.subr.bf16.mxu1 %v1977_v15  ;;  %v2010_v57 = vld [vmem:[%s2733_s10 + $0x28] sm:$0xff]   ;;  %v715_v61 = vld [vmem:[%s2730_s7] sm:$0x3]  ;;  %v2012_v13 = vld [vmem:[%s2733_s10 + $0x38] sm:$0xff]  }
  0x85   : > { %v720_v63 = vrot.slane %v715_v61, %v719_v60  ;;  %v724_v1 = vrot.slane %v715_v61, %v723_v62  ;;  %v1693_v15 = vld [vmem:[%s2732_s9] ss:$0 sm:$0xff] }
  0x86   : > { %1799 = vmatpush3.bf16.msra.mxu0 %v1961_v10  ;;  %s2630_s5 = scalar_lea.vmem %s2772_s28, %s2495_s15  ;;  %s2250_s15 = smov [#allocation9]  }
  0x87   : > { %1800 = vmatprep.subr.bf16.mxu0 %v2244_v0  ;;  %816 = vmatpush1.bf16.msra.mxu1 %v1979_v17  ;;  %583 = vst.msk [vmem:[%s2630_s5] sm:$0xff] %vm582_vm6, %v2244_v0  ;;  %s2641_s22 = scalar_lea.hbm %s2773_s18, %s1735_s13 }
  0x88   : > { %817 = vmatprep.subr.bf16.mxu1 %v1980_v18 }
  0x8a   : > { %1801 = vmatpush3.bf16.msra.mxu0 %v1962_v12  ;;  %v2011_v12 = vld [vmem:[%s2733_s10 + $0x30] sm:$0xff]  }
  0x8b   : > { %1802 = vmatprep.subr.bf16.mxu0 %v2244_v0  ;;  %818 = vmatpush1.bf16.msra.mxu1 %v1982_v21 }
  0x8c   : > { %819 = vmatprep.subr.bf16.mxu1 %v1983_v22 }
  0x8e   : > { %1803 = vmatpush3.bf16.msra.mxu0 %v1963_v16 }
  0x8f   : > { %1804 = vmatprep.subr.bf16.mxu0 %v2244_v0  ;;  %820 = vmatpush1.bf16.msra.mxu1 %v1985_v24 }
  0x90   : > { %821 = vmatprep.subr.bf16.mxu1 %v1986_v25 }
  0x92   : > { %1805 = vmatpush3.bf16.msra.mxu0 %v1964_v19 }
  0x93   : > { %822 = vmatpush1.bf16.msra.mxu1 %v1988_v26  ;;  %1748 = vmatprep.subr.bf16.mxu0 %v1989_v28 }
  0x94   : > { %1810 = vmatprep.subr.bf16.mxu1 %v2244_v0 }
  0x95   : > { %1807 = vmatmul.mubr.bf16.vlgmr.msra.gmra.mrb[0].mxu0 %v585_v23  ;;  %v1710_v23 = vld [vmem:[%s2734_s11] ss:$0 sm:$0xff] }
  0x96   : > { %1749 = vmatpush3.bf16.msra.mxu0 %v1990_v29 }
  0x97   : > { %1750 = vmatprep.subr.bf16.mxu0 %v1991_v30 }
  0x9a   : > { %1751 = vmatpush3.bf16.msra.mxu0 %v1992_v31 }
  0x9b   : > { %1752 = vmatprep.subr.bf16.mxu0 %v1993_v32 }
  0x9e   : > { %1753 = vmatpush3.bf16.msra.mxu0 %v1994_v33 }
  0x9f   : > { %1754 = vmatprep.subr.bf16.mxu0 %v1995_v34 }
  0xa2   : > { %1755 = vmatpush3.bf16.msra.mxu0 %v1996_v35 }
  0xa3   : > { %1756 = vmatprep.subr.bf16.mxu0 %v1997_v36 }
  0xa6   : > { %1757 = vmatpush3.bf16.msra.mxu0 %v1998_v37 }
  0xa7   : > { %1758 = vmatprep.subr.bf16.mxu0 %v1999_v38 }
  0xaa   : > { %1759 = vmatpush3.bf16.msra.mxu0 %v2000_v39 }
  0xab   : > { %1760 = vmatprep.subr.bf16.mxu0 %v2001_v48 }
  0xae   : > { %1761 = vmatpush3.bf16.msra.mxu0 %v2002_v49 }
  0xaf   : > { %1762 = vmatprep.subr.bf16.mxu0 %v2003_v50 }
  0xb2   : > { %1763 = vmatpush3.bf16.msra.mxu0 %v2004_v51 }
  0xb3   : > { %1830 = vmatprep.subr.bf16.mxu0 %v2244_v0 }
 0x168   : > { %v691_v41 = vpop.f32.mrb[0].mxu0 }
 0x169   : > { %v692_v42 = vadd.f32 %v1668_v40, %v691_v41  ;;  %v1808_v43 = vpop.f32.mrb[1].mxu0  ;;  %v2584_v40 = vld [vmem:[%s569_s12] sm:$0xff]  ;;  %s1449_s12 = scalar_lea.sflag [#allocation10], %s2609_s14 }
 0x16a   : > { %v694_v44 = vpop.f32.mrb[2].mxu0 }
 0x16b   : > { %v2514_v45 = vmax.f32 %v692_v42, 0.0  ;;  %v1809_v46 = vpop.f32.mrb[3].mxu0 }
 0x16d   : > { %v698_v47 = vpack.c.bf16 %v2514_v45, %v2514_v45 }
 0x16f   : > { %840 = vmatmul.mubr.bf16.vlgmr.msra.gmra.mrb[0].mxu1 %v698_v47 }
 0x170   : > { %1826 = vmatprep.mubr.msk.bf16.mxu1 %vm2245_vm0, %v2244_v0  ;;  %1811 = vmatpush3.bf16.msra.mxu1 %v2005_v52 }
 0x171   : > { %1812 = vmatprep.subr.bf16.mxu1 %v2244_v0 }
 0x174   : > { %1813 = vmatpush3.bf16.msra.mxu1 %v2006_v53 }
 0x175   : > { %1814 = vmatprep.subr.bf16.mxu1 %v2244_v0 }
 0x178   : > { %1815 = vmatpush3.bf16.msra.mxu1 %v2007_v54 }
 0x179   : > { %1816 = vmatprep.subr.bf16.mxu1 %v2244_v0 }
 0x17c   : > { %1817 = vmatpush3.bf16.msra.mxu1 %v2008_v55 }
 0x17d   : > { %1818 = vmatprep.subr.bf16.mxu1 %v2244_v0 }
 0x180   : > { %1819 = vmatpush3.bf16.msra.mxu1 %v2009_v56 }
 0x181   : > { %1820 = vmatprep.subr.bf16.mxu1 %v2244_v0 }
 0x184   : > { %1821 = vmatpush3.bf16.msra.mxu1 %v2010_v57 }
 0x185   : > { %1822 = vmatprep.subr.bf16.mxu1 %v2244_v0 }
 0x188   : > { %1823 = vmatpush3.bf16.msra.mxu1 %v2011_v12 }
 0x189   : > { %1824 = vmatprep.subr.bf16.mxu1 %v2244_v0 }
 0x18c   : > { %1825 = vmatpush3.bf16.msra.mxu1 %v2012_v13 }
 0x18d   : > { %1850 = vmatprep.subr.mxu1 %v2244_v0 }
 0x242   : > { %v841_v2 = vpop.f32.mrb[0].mxu1 }
 0x243   : > { %v842_v3 = vadd.f32 %v841_v2, %v720_v63  ;;  %v843_v4 = vpop.f32.mrb[1].mxu1  ;;  %v2014_v2 = vld [vmem:[#allocation2 + $0x8] sm:$0xff]  }
 0x244   : > { %v844_v5 = vadd.f32 %v843_v4, %v724_v1  ;;  %v845_v6 = vpop.f32.mrb[2].mxu1  ;;  %v2013_v1 = vld [vmem:[#allocation2] sm:$0xff]   ;;  %v2016_v4 = vld [vmem:[#allocation2 + $0x18] sm:$0xff]  }
 0x245   : > { %v848_v7 = vmax.f32 %v842_v3, 0.0  ;;  %v846_v8 = vpop.f32.mrb[3].mxu1  ;;  %v2015_v3 = vld [vmem:[#allocation2 + $0x10] sm:$0xff]  }
 0x246   : > { %v849_v9 = vmax.f32 %v844_v5, 0.0  ;;  %v2017_v5 = vld [vmem:[#allocation2 + $0x20] sm:$0xff]  }
 0x247   : > { %v850_v11 = vpack.c.bf16 %v848_v7, %v848_v7  ;;  %v2018_v7 = vld [vmem:[#allocation2 + $0x28] sm:$0xff]  }
 0x248   : > { %v851_v10 = vpack.c.bf16 %v849_v9, %v849_v9  ;;  %v2019_v9 = vld [vmem:[#allocation2 + $0x30] sm:$0xff]  }
 0x24a   : > { %1019 = vmatprep.mubr.bf16.mxu0 %v851_v10 }
 0x24b   : > { %1020 = vmatmul.mubr.bf16.vlgmr.msra.gmra.mrb[4].mxu0 %v850_v11 }
 0x24c   : > { %1846 = vmatprep.mubr.msk.bf16.mxu0 %vm2245_vm0, %v2244_v0  ;;  %1831 = vmatpush3.bf16.msra.mxu0 %v2013_v1 }
 0x24d   : > { %1832 = vmatprep.subr.bf16.mxu0 %v2244_v0 }
 0x250   : > { %1833 = vmatpush3.bf16.msra.mxu0 %v2014_v2 }
 0x251   : > { %1834 = vmatprep.subr.bf16.mxu0 %v2244_v0 }
 0x254   : > { %1835 = vmatpush3.bf16.msra.mxu0 %v2015_v3 }
 0x255   : > { %1836 = vmatprep.subr.bf16.mxu0 %v2244_v0 }
 0x258   : > { %1837 = vmatpush3.bf16.msra.mxu0 %v2016_v4 }
 0x259   : > { %1838 = vmatprep.subr.bf16.mxu0 %v2244_v0 }
 0x25c   : > { %1839 = vmatpush3.bf16.msra.mxu0 %v2017_v5 }
 0x25d   : > { %1840 = vmatprep.subr.bf16.mxu0 %v2244_v0 }
 0x260   : > { %1841 = vmatpush3.bf16.msra.mxu0 %v2018_v7 }
 0x261   : > { %1842 = vmatprep.subr.bf16.mxu0 %v2244_v0 }
 0x264   : > { %1843 = vmatpush3.bf16.msra.mxu0 %v2019_v9 }
 0x265   : > { %1844 = vmatprep.subr.bf16.mxu0 %v2244_v0 }
 0x31e   : > { %v1764_v14 = vpop.f32.mrb[4].mxu0 }
 0x31f   : > { %v1765_v16 = vpop.f32.mrb[5].mxu0 }
 0x320   : > { %v1766_v17 = vadd.f32 %v1765_v16, %v1764_v14  ;;  %v1767_v18 = vpop.f32.mrb[6].mxu0 }
 0x321   : > { %v1768_v19 = vpop.f32.mrb[7].mxu0 }
 0x322   : > { %v1022_v20 = vadd.f32 %v1766_v17, %v1693_v15 }
 0x324   : > { %v1027_v21 = vmax.f32 %v1022_v20, 0.0 }
 0x326   : > { %v1028_v22 = vpack.c.bf16 %v1027_v21, %v1027_v21 }
 0x328   : > { %1827 = vmatmul.mubr.bf16.vlgmr.msra.gmra.mrb[4].mxu1 %v1028_v22 }
 0x329   : > { %1852 = vmatprep.mubr.msk.f32.mxu1 %vm2245_vm0, %v2244_v0 }
 0x3fb   : > { %v1134_v24 = vpop.f32.mrb[4].mxu1 }
 0x3fc   : > { %v2570_v25 = vadd.f32 %v1710_v23, %v1134_v24  ;;  %v1828_v26 = vpop.f32.mrb[5].mxu1  ;;  %v2020_v24 = vld [vmem:[#allocation2 + $0x38] sm:$0xff]  }
 0x3fd   : > { %v1137_v27 = vpop.f32.mrb[6].mxu1  ;;  %1845 = vmatpush3.bf16.msra.mxu0 %v2020_v24 }
 0x3fe   : > { %v1829_v28 = vpop.f32.mrb[7].mxu1  ;;  %v1147_v29 = vsel %vm1146_vm1, %v2570_v25, -inf  ;;  %v1325_v42 = vsub.f32 %v2570_v25, %v2584_v40  ;;  %v1140_v6 = vsub.f32 0.0, %v2570_v25 }
 0x3ff   : > { %1148 = vmax.xlane.f32.xlu0 %v1147_v29 }
 0x400   : > { %v1352_v43 = vmul.f32 %v1325_v42, %v1325_v42  ;;  %v1141_v8 = vmul.f32 1.442695, %v1140_v6  ;;  %v2249_v42 = vmov 1.0  }
 0x48c   : > { %v1149_v30 = vpop.xlane.xlu0 %1148 }
 0x48d   : > { %v1150_v31 = vsub.f32 %v2570_v25, %v1149_v30 }
 0x48f   : > { %v1151_v32 = vmul.f32 1.442695, %v1150_v31  ;;  %v1318_v31 = vstv %s1730_s21  ;;  %s2121_s21 = sshll.u32 %s2250_s15, 4  ;;  %s2122_s21 = int_to_ptr.vmem [resolvable:$false] %s2121_s21 }
 0x490   : > { %s2123_s27 = scalar_lea.vmem %s2122_s21, 256  ;;  %p2124_p2 = scmp.lt.s32.totalorder %s1482_s19, %s2122_s21 }
 0x491   : > { %2021 = vpow2.f32 %v1151_v32 }
 0x49b   : > { %v2022_v33 = vpop.eup %2021 }
 0x49c   : > { %1154 = vrot.lane.b32.xlu0 %v2022_v33, %s2247_s26 }
 0x50e   : > { %v1155_v34 = vpop.permute.xlu0 %1154 }
 0x50f   : > { %v1158_v35 = vsel %vm1157_vm2, %v1155_v34, 0.0 }
 0x510   : > { %1159 = vadd.xlane.f32.xlu1 %v1158_v35 }
 0x59d   : > { %v1160_v36 = vpop.xlane.xlu1 %1159 }
 0x59e   : > { %2023 = vrcp.f32 %v1160_v36 }
 0x5a8   : > { %v2024_v37 = vpop.eup %2023 }
 0x5a9   : > { %v1162_v38 = vmul.f32 %v2024_v37, %v2022_v33  ;;  %v1319_v33 = vadd.s32 %v1318_v31, %v2545_v59 }
 0x5ab   : > { %v1326_v39 = vsel %vm1146_vm1, %v1162_v38, -inf  ;;  %v1342_v41 = vmul.f32 %v2584_v40, %v1162_v38  ;;  %vm1320_vm5 = vcmp.lt.s32.totalorder %v1319_v33, 16 }
 0x5ac   : > { %1327 = vmax.xlane.f32.xlu1 %v1326_v39  ;;  %v1731_v39 = vsel %vm1320_vm5, 1.0, %v2244_v0 }
 0x5bd   : > { %1174 = vrot.lane.b32.xlu1 %v2570_v25, %s2247_s26 }
 0x5c1   : > { %1167 = vrot.lane.b32.xlu1 %v1162_v38, %s2247_s26 }
 0x5c5   : > { %1344 = vrot.lane.b32.xlu1 %v1342_v41, %s2247_s26 }
 0x5c9   : > { %1354 = vrot.lane.b32.xlu1 %v1352_v43, %s2248_s17 }
 0x639   : > { %v2591_v44 = vpop.xlane.xlu1 %1327 }
 0x63a   : > { %v1329_v46 = vsub.f32 %v1162_v38, %v2591_v44 }
 0x63c   : > { %v1330_v47 = vmul.f32 1.442695, %v1329_v46 }
 0x63d   : > { %v1175_v48 = vpop.permute.xlu1 %1174 }
 0x63e   : > { %2025 = vpow2.f32 %v1330_v47  ;;  %v1177_v49 = vadd.f32 %v1175_v48, %v2570_v25 }
 0x63f   : > { %2027 = vpow2.f32 %v1141_v8 }
 0x640   : > { %v1178_v51 = vmul.f32 0.5, %v1177_v49 }
 0x641   : > { %v1168_v50 = vpop.permute.xlu1 %1167 }
 0x642   : > { %v1170_v52 = vsub.f32 %v1162_v38, %v1168_v50  ;;  %v1720_v53 = vadd.f32 -0.5, %v1178_v51 }
 0x644   : > { %v1171_v54 = vmul.f32 0.1, %v1170_v52  ;;  %v1180_v56 = vmul.f32 0.1, %v1720_v53 }
 0x645   : > { %v1345_v60 = vpop.permute.xlu1 %1344 }
 0x646   : > { %v1172_v57 = vadd.f32 1.0, %v1171_v54  ;;  %v1181_v58 = vadd.f32 1.0, %v1180_v56  ;;  %v1347_v61 = vsel %vm1157_vm2, %v1345_v60, 0.0 }
 0x648   : > { %v2026_v55 = vpop.eup %2025 }
 0x649   : > { %1333 = vrot.lane.b32.xlu0 %v2026_v55, %s2247_s26  ;;  %v1355_v62 = vpop.permute.xlu1 %1354  ;;  %v2028_v10 = vpop.eup %2027 }
 0x64a   : > { %v1358_v63 = vsel %vm1357_vm3, %v1355_v62, 0.0  ;;  %v1143_v11 = vadd.f32 1.0, %v2028_v10 }
 0x64c   : > { %2029 = vrcp.f32 %v1143_v11 }
 0x64d   : > { %1183 = vrot.lane.b32.xlu0 %v1172_v57, %s2247_s26  ;;  %s2774_s26 = smov %s2773_s18 }
 0x651   : > { %1188 = vrot.lane.b32.xlu0 %v1181_v58, %s2248_s17  ;;  %s2117_s17 = scalar_lea.vmem %s1482_s19, 128 }
 0x652   : > { %p2118_p1 = scmp.ne.s32.totalorder %s1482_s19, %s2117_s17  ;;  %p2125_p3 = scmp.lt.s32.totalorder %s2123_s27, %s2117_s17 }
 0x654   : > { %p2119_p11 = pnand %p2118_p1, %p2775_p10  ;;  %p2126_p5 = por %p2125_p3, %p2124_p2 }
 0x656   : > { %v2030_v12 = vpop.eup %2029  ;;  %p2120_p0 = pneg %p2119_p11 }
 0x657   : > { %v1719_v13 = vadd.f32 -0.5, %v2030_v12  ;;  %v1324_v34 = vsub.f32 %v2030_v12, %v2584_v40 }
 0x658   : > { %p2127_p6 = pnand %p2126_p5, %p2120_p0 }
 0x659   : > { %v1164_v16 = vmul.f32 0.1, %v1719_v13  ;;  %v1350_v36 = vmul.f32 %v1324_v34, %v1324_v34 }
 0x65b   : > { %v1165_v18 = vadd.f32 1.0, %v1164_v16 }
 0x670   : > { %1348 = vadd.xlane.f32.xlu0 %v1347_v61 }
 0x674   : > { %1359 = vadd.xlane.f32.xlu0 %v1358_v63 }
 0x6bb   : > { %v1334_v14 = vpop.permute.xlu0 %1333 }
 0x6bc   : > { %v1336_v15 = vsel %vm1157_vm2, %v1334_v14, 0.0 }
 0x6bd   : > { %1337 = vadd.xlane.f32.xlu1 %v1336_v15 }
 0x6bf   : > { %v1184_v17 = vpop.permute.xlu0 %1183 }
 0x6c0   : > { %v1186_v19 = vmul.f32 %v1184_v17, %v1165_v18 }
 0x6c3   : > { %v1189_v20 = vpop.permute.xlu0 %1188 }
 0x6c4   : > { %v1191_v21 = vmul.f32 %v1189_v20, %v1186_v19 }
 0x6c6   : > { %v1192_v22 = vmul.f32 0.1, %v1191_v21 }
 0x6c8   : > { %v1193_v23 = vadd.f32 0.9, %v1192_v22 }
 0x6ca   : > { %1196 = vperm.xlu0 %1956, %v1193_v23  }
 0x6fd   : > { %v1349_v25 = vpop.xlane.xlu0 %1348 }
 0x701   : > { %v1360_v26 = vpop.xlane.xlu0 %1359 }
 0x749   : > { %v1197_v27 = vpop.permute.xlu0 %1196 }
 0x74a   : > { %v1199_v28 = vmul.f32 %v1197_v27, %v2514_v45  ;;  %v1338_v29 = vpop.xlane.xlu1 %1337 }
 0x74b   : > { %2031 = vlog2.f32 %v1338_v29 }
 0x74c   : > { %1200 = vst [vmem:[%s2615_s6] sm:$0xff] %v1199_v28  ;;  %v1201_v30 = vpack.c.bf16 %v1199_v28, %v1199_v28 }
 0x74e   : > { %1847 = vmatmul.mubr.bf16.vlgmr.msra.gmra.mrb[8].mxu0 %v1201_v30 }
 0x755   : > { %v2032_v32 = vpop.eup %2031 }
 0x756   : > { %v1340_v35 = vmul.f32 0.6931472, %v2032_v32 }
 0x758   : > { %v1341_v45 = vadd.f32 %v1340_v35, %v2591_v44 }
 0x75a   : > { %v1351_v37 = vsub.f32 %v1341_v45, %v1349_v25 }
 0x75c   : > { %v1362_v38 = vsel %vm1361_vm4, %v1350_v36, %v1351_v37 }
 0x75d   : > { %v1363_v41 = vsel %vm1357_vm3, %v1362_v38, %v1360_v26 }
 0x75e   : > { %v1364_v59 = vsel %vm1157_vm2, %v1363_v41, 0.0 }
 0x75f   : > { %v1365_v40 = vmul.f32 %v1731_v39, %v1364_v59 }
 0x761   : > { %1851 = vmatpush3.msra.mxu1 %v1365_v40 }
 0x762   : > { %1853 = vmatmul.mubr.msk.f32.vlgmr.msra.gmra.mrb[8].mxu1 %vm582_vm6, %v2249_v42 }
 0x763   : > { %2130 = shalt.err (!%p2127_p6)
}
 0x764   : > { %s2131_s6 = scalar_lea.hbm %s2641_s22, 128  ;;  %s2135_s29 = scalar_lea.hbm %s2774_s26, 256 }
 0x765   : > { %p2132_p7 = scmp.ne.s32.totalorder %s2641_s22, %s2131_s6  ;;  %p2136_p4 = scmp.lt.u32.totalorder %s2641_s22, %s2774_s26 }
 0x766   : > { %p2137_p8 = scmp.lt.u32.totalorder %s2135_s29, %s2131_s6  ;;  %p2139_p1 = scmp.lt.u32.totalorder %s2131_s6, %s2641_s22 }
 0x767   : > { %p2133_p9 = pnand %p2132_p7, %p2775_p10 }
 0x768   : > { %p2138_p13 = por %p2137_p8, %p2136_p4 }
 0x769   : > { %p2134_p12 = pneg %p2133_p9 }
 0x76a   : > { %p2140_p11 = por %p2139_p1, %p2138_p13 }
 0x76c   : > { %p2141_p0 = pnand %p2140_p11, %p2134_p12 }
 0x76e   : > { %2144 = shalt.err (!%p2141_p0)
}
 0x76f   : > { %1868 = dma.vmem_to_hbm [thread:$0]  (%p2775_p10), %s1482_s19, 128, %s2641_s22, %s1449_s12  }
 0x770   : > { %s2776_s21 = sld [smem:[#allocation22_spill]]  ;;  %s545_s27 = scalar_lea.vmem [#allocation8], %s1663_s24 }
 0x771   : > { %s1467_s20 = sshll.u32 %s545_s27, 4  ;;  %s2777_s29 = sld [smem:[#allocation24_spill]]  ;;  %s2674_s20 = int_to_ptr.vmem [resolvable:$true] %s1467_s20 }
 0x772   : > { %s1444_s22 = scalar_lea.sflag [#allocation4], %s2609_s14  ;;  %s2145_s24 = scalar_lea.vmem %s2674_s20, 128 }
 0x773   : > { %p2146_p2 = scmp.ne.s32.totalorder %s2674_s20, %s2145_s24  ;;  %s2251_s16 = smov [#allocation8]  }
 0x774   : > { %s2149_s19 = sshll.u32 %s2251_s16, 4  ;;  %s2150_s19 = int_to_ptr.vmem [resolvable:$false] %s2149_s19 }
 0x775   : > { %p2147_p3 = pnand %p2146_p2, %p2775_p10  ;;  %s2151_s12 = scalar_lea.vmem %s2150_s19, 256 }
 0x776   : > { %v1721_v0 = vld [vmem:[%s2776_s21] ss:$0 sm:$0xff]  ;;  %p2152_p6 = scmp.lt.s32.totalorder %s2674_s20, %s2150_s19  ;;  %p2153_p7 = scmp.lt.s32.totalorder %s2151_s12, %s2145_s24 }
 0x777   : > { %s2778_s25 = smov %s2777_s29  ;;  %s2672_s18 = scalar_lea.hbm %s2777_s29, %s1735_s13 }
 0x778   : > { %p2148_p5 = pneg %p2147_p3  ;;  %p2154_p9 = por %p2153_p7, %p2152_p6 }
 0x77a   : > { %p2155_p12 = pnand %p2154_p9, %p2148_p5 }
 0x821   : > { %v1307_v43 = vpop.f32.mrb[8].mxu0 }
 0x822   : > { %v1308_v44 = vadd.f32 %v1721_v0, %v1307_v43  ;;  %v1848_v46 = vpop.f32.mrb[9].mxu0 }
 0x823   : > { %v1310_v47 = vpop.f32.mrb[10].mxu0 }
 0x824   : > { %1313 = vst [vmem:[%s545_s27] sm:$0xff] %v1308_v44  ;;  %v1849_v48 = vpop.f32.mrb[11].mxu0 }
 0x825   : > { %2158 = shalt.err (!%p2155_p12)
}
 0x826   : > { %s2159_s14 = scalar_lea.hbm %s2672_s18, 128  ;;  %s2163_s15 = scalar_lea.hbm %s2778_s25, 256 }
 0x827   : > { %p2160_p4 = scmp.ne.s32.totalorder %s2672_s18, %s2159_s14  ;;  %p2164_p1 = scmp.lt.u32.totalorder %s2672_s18, %s2778_s25 }
 0x828   : > { %p2165_p11 = scmp.lt.u32.totalorder %s2163_s15, %s2159_s14  ;;  %p2167_p2 = scmp.lt.u32.totalorder %s2159_s14, %s2672_s18 }
 0x829   : > { %p2161_p8 = pnand %p2160_p4, %p2775_p10 }
 0x82a   : > { %p2166_p0 = por %p2165_p11, %p2164_p1 }
 0x82b   : > { %p2162_p13 = pneg %p2161_p8 }
 0x82c   : > { %p2168_p3 = por %p2167_p2, %p2166_p0 }
 0x82e   : > { %p2169_p5 = pnand %p2168_p3, %p2162_p13 }
 0x830   : > { %2172 = shalt.err (!%p2169_p5)
}
 0x831   : > { %1867 = dma.vmem_to_hbm [thread:$0]  (%p2775_p10), %s2674_s20, 128, %s2672_s18, %s1444_s22   ;;  %v1366_v49 = vld [vmem:[%s2630_s5] sm:$0xff] }
 0x835   : > { %v1437_v50 = vpop.f32.mrb[8].mxu1 }
 0x836   : > { %v1441_v51 = vadd.f32 %v1437_v50, %v1366_v49  ;;  %v1854_v52 = vpop.f32.mrb[9].mxu1 }
 0x838   : > { %1442 = vst.msk [vmem:[%s2630_s5] sm:$0xff] %vm582_vm6, %v1441_v51 }
 0x839 PF: > { %s2779_s6 = sld [smem:[#allocation18_spill]]  ;;  %s2780_s28 = sld [smem:[#allocation15_spill]] }
 0x83a   : > { %s2781_s29 = sld [smem:[#allocation20_spill]] }
 0x83f   : > { %p1894_p6 = scmp.ge.s32.totalorder %s2779_s6, 2  ;;  %s1496_s24 = sand.u32 1, %s2780_s28  }
 0x840   : > { %p2782_p7 = scmp.ne.s32.totalorder %s2781_s29, 0  ;;  %s1497_s23 = scalar_lea.sflag [#allocation4], %s1496_s24 }
 0x842   : > { %p1882_p9 = pnand %p1894_p6, %p2782_p7 }
 0x844   : > { %2206 = dma.done.wait (!%p1882_p9), %s1497_s23, 128  }
 0x845   : > { %2208 = vsyncadd (!%p1882_p9), %s1497_s23, 4294967168  ;;  %s1506_s16 = scalar_lea.sflag [#allocation10], %s1496_s24 }
 0x846   : > { %2210 = dma.done.wait (!%p1882_p9), %s1506_s16, 128  }
 0x847   : > { %2212 = vsyncadd (!%p1882_p9), %s1506_s16, 4294967168  ;;  %s33_s18 = sadd.s32 1, %s2779_s6   ;;  %s2783_s20 = sld [smem:[#allocation16_spill]] }
 0x848   : > { %p30_p10 = scmp.ge.s32.totalorder %s33_s18, 4   ;;  %s2784_s15 = sld [smem:[#allocation21_spill]] }
 0x849   : > { %s2785_s16 = sld [smem:[#allocation17_spill]]  ;;  %s2786_s17 = sld [smem:[#allocation19_spill]] }
 0x84a   : > { %s2787_s29 = smov %s2219_s30  ;;  %32 = sbr.rel (!%p30_p10) target bundleno = 14 (0xe), region = 152 }
 0x84d   : > { %s2788_s30 = smov %s2783_s20 }
 0x851   :  { %1518 = vsyncpa [#allocation3], 1 }
 0x852   :  { %1520 = vsyncpa [#allocation3 + $0x1], 1 }
 0x853   :  { %1521 = vsyncpa [#allocation6], 1 }
 0x854   :  { %1522 = vsyncpa [#allocation4], 1 }
 0x855   :  { %1524 = vsyncpa [#allocation4 + $0x1], 1 }
 0x856   :  { %1525 = vsyncpa [#allocation10], 1 }
 0x857   :  { %1527 = vsyncpa [#allocation10 + $0x1], 1 }

</bundles_post_ra>
